<compile_context>
chip_gen: v7x
topology: tpu7x:2x2x1
jax: 0.10.0
libtpu: 0.0.40
codegen_flags: <defaults>
</compile_context>

<pallas_src>
import functools

import jax
import jax.numpy as jnp
from jax import lax
from jax.experimental import pallas as pl
from jax.experimental.pallas import tpu as pltpu

_NEG = -1.0e9      # finite "-inf" for padded tags (avoids NaN from exp/-inf)
_LANES = 128
_SUBLANES = 8


def _round_up(x, m):
    return (x + m - 1) // m * m


def _crf_nll_kernel(logits_ref, tags_ref, mask_ref, trans_ref, start_ref,
                    end_ref, out_ref):
    """Per-batch-tile CRF NLL.

    logits_ref : (S, Tp, Bt) f32  emissions, batch on lanes
    tags_ref   : (S, Bt)     i32  gold tags
    mask_ref   : (S, Bt)     f32  0/1 validity (contiguous prefix)
    trans_ref  : (Tp, Tp)    f32  transitions[cur, nxt] (padded rows/cols = -1e9)
    start_ref  : (Tp, 1)     f32  start transitions (padded = -1e9)
    end_ref    : (Tp, 1)     f32  end transitions   (padded = -1e9)
    out_ref    : (1, Bt)     f32  per-example NLL
    """
    S, Tp, Bt = logits_ref.shape

    trans = trans_ref[...]
    start = start_ref[...]
    end = end_ref[...]

    # Hoisted invariants (JAX does not CSE broadcast_in_dim inside loops).
    trans_b = jnp.broadcast_to(trans[:, :, None], (Tp, Tp, Bt))   # (cur, nxt, B)
    tag_iota = lax.broadcasted_iota(jnp.int32, (Tp, Bt), 0)

    def onehot(tag_row):          # (1, Bt) i32 -> (Tp, Bt) f32, pure VPU compares
        return (tag_iota == tag_row).astype(jnp.float32)

    # ---- step 0 ----
    emit = logits_ref[0]                                  # (Tp, Bt)
    mask_t = mask_ref[pl.ds(0, 1), :]                     # (1, Bt)
    oh = onehot(tags_ref[pl.ds(0, 1), :])                 # (Tp, Bt)

    alpha = start + emit                                  # (Tp, Bt)
    score = jnp.sum(oh * start, axis=0, keepdims=True)    # (1, Bt)
    oh_last = oh                                          # one-hot of last valid tag

    oh_prev, emit_prev, mask_prev = oh, emit, mask_t

    # ---- fused time loop: denominator recursion + gold-path score ----
    # S is static & small -> full unroll gives the LLO scheduler cross-iteration
    # visibility (EUP exp/log of step t overlaps VALU/XLU of step t+1).  For long
    # sequences switch to a partially-unrolled lax.fori_loop (unroll=2..4)
    # carrying (alpha, score, oh_prev, emit_prev, mask_prev, oh_last).
    for t in range(1, S):
        emit = logits_ref[t]                              # one (Tp, Bt) slice/step
        mask_t = mask_ref[pl.ds(t, 1), :]                 # (1, Bt)
        oh = onehot(tags_ref[pl.ds(t, 1), :])             # (Tp, Bt)

        # denominator: alpha'[nxt] = logsumexp_cur(alpha[cur] + trans[cur,nxt]) + emit[nxt]
        inner = alpha[:, None, :] + trans_b               # (cur, nxt, B)
        m = jnp.max(inner, axis=0)                        # leading-axis VALU reduce
        lse = m + jnp.log(jnp.sum(jnp.exp(inner - m[None, :, :]), axis=0))
        new_alpha = lse + emit
        alpha = new_alpha * mask_t + alpha * (1.0 - mask_t)

        # numerator: transitions[cur,nxt] and logits[t-1,cur] via one-hots (VPU only)
        rows = jnp.sum(oh_prev[:, None, :] * trans_b, axis=0)      # (nxt, B)
        trans_sc = jnp.sum(rows * oh, axis=0, keepdims=True)       # (1, B)
        emit_sc = jnp.sum(emit_prev * oh_prev, axis=0, keepdims=True)
        score = score + trans_sc * mask_t + emit_sc * mask_prev

        # track the one-hot of the last *valid* tag (replaces sum(mask)-1 gather)
        oh_last = oh * mask_t + oh_last * (1.0 - mask_t)

        oh_prev, emit_prev, mask_prev = oh, emit, mask_t

    # ---- close the denominator ----
    stops = alpha + end
    ms = jnp.max(stops, axis=0, keepdims=True)
    log_den = ms + jnp.log(jnp.sum(jnp.exp(stops - ms), axis=0, keepdims=True))

    # ---- close the numerator ----
    last_trans = jnp.sum(oh_last * end, axis=0, keepdims=True)
    last_emit = jnp.sum(emit_prev * oh_last, axis=0, keepdims=True)  # emit_prev == logits[S-1]
    score = score + last_trans + last_emit * mask_prev               # mask_prev == mask[S-1]

    out_ref[...] = log_den - score


@functools.partial(jax.jit, static_argnames=("reduction", "batch_tile"))
def crf_forward(logits, tags, mask, transitions, start_transitions,
                end_transitions, reduction="sum", batch_tile=None):
    """Pallas-backed ConditionalRandomField.forward (include_start_end=True)."""
    B, S, T = logits.shape
    Tp = _round_up(T, _SUBLANES)
    if batch_tile is None:
        batch_tile = min(_round_up(B, _LANES), 512)   # lane-dense, VMEM-friendly
    Bt = int(batch_tile)
    assert Bt % _LANES == 0
    Bp = _round_up(B, Bt)

    # ---- layout plumbing: batch -> lanes, tags -> sublanes ----
    logits_t = jnp.pad(jnp.transpose(logits.astype(jnp.float32), (1, 2, 0)),
                       ((0, 0), (0, Tp - T), (0, Bp - B)))            # (S, Tp, Bp)
    tags_t = jnp.pad(jnp.transpose(tags.astype(jnp.int32), (1, 0)),
                     ((0, 0), (0, Bp - B)))                           # (S, Bp)
    mask_t = jnp.pad(jnp.transpose(mask.astype(jnp.float32), (1, 0)),
                     ((0, 0), (0, Bp - B)))                           # (S, Bp)
    trans_p = jnp.pad(transitions.astype(jnp.float32),
                      ((0, Tp - T), (0, Tp - T)), constant_values=_NEG)
    start_p = jnp.pad(start_transitions.astype(jnp.float32), (0, Tp - T),
                      constant_values=_NEG).reshape(Tp, 1)
    end_p = jnp.pad(end_transitions.astype(jnp.float32), (0, Tp - T),
                    constant_values=_NEG).reshape(Tp, 1)

    # Batch axis is embarrassingly parallel (multi-TC chips split it).  Raise the
    # scoped-VMEM limit only if the double-buffered working set needs it (v5e
    # default is 16 MiB); on v7x (64 MiB physical) prefer a smaller batch_tile.
    block_bytes = 4 * (S * Tp * Bt + 2 * S * Bt + Tp * Tp + 2 * Tp + Bt)
    vmem_need = 2 * block_bytes + (1 << 20)
    cp = dict(dimension_semantics=("parallel",))
    if vmem_need > (12 << 20):
        cp["vmem_limit_bytes"] = int(min(vmem_need + (4 << 20), 48 << 20))
    compiler_params = pltpu.CompilerParams(**cp)

    nll = pl.pallas_call(
        _crf_nll_kernel,
        grid=(Bp // Bt,),
        in_specs=[
            pl.BlockSpec((S, Tp, Bt), lambda b: (0, 0, b)),
            pl.BlockSpec((S, Bt), lambda b: (0, b)),
            pl.BlockSpec((S, Bt), lambda b: (0, b)),
            pl.BlockSpec((Tp, Tp), lambda b: (0, 0)),
            pl.BlockSpec((Tp, 1), lambda b: (0, 0)),
            pl.BlockSpec((Tp, 1), lambda b: (0, 0)),
        ],
        out_specs=pl.BlockSpec((1, Bt), lambda b: (0, b)),
        out_shape=jax.ShapeDtypeStruct((1, Bp), jnp.float32),
        compiler_params=compiler_params,
    )(logits_t, tags_t, mask_t, trans_p, start_p, end_p)

    nll = nll[0, :B]                     # drop padded batch lanes
    if reduction == "sum":
        return jnp.sum(nll)
    if reduction == "mean":
        return jnp.mean(nll)
    return nll


# ------------------------- pure-JAX reference ------------------------------
def _crf_forward_ref(logits, tags, mask, transitions, start_t, end_t):
    B, S, T = logits.shape
    mask_f = mask.astype(jnp.float32)

    # denominator
    alpha = start_t[None, :] + logits[:, 0, :]
    for i in range(1, S):
        inner = alpha[:, :, None] + logits[:, i, :][:, None, :] + transitions[None]
        new_alpha = jax.scipy.special.logsumexp(inner, axis=1)
        mi = mask_f[:, i][:, None]
        alpha = new_alpha * mi + alpha * (1.0 - mi)
    log_den = jax.scipy.special.logsumexp(alpha + end_t[None, :], axis=-1)

    # numerator
    score = start_t[tags[:, 0]]
    for i in range(S - 1):
        cur, nxt = tags[:, i], tags[:, i + 1]
        trans_score = transitions[cur, nxt]
        emit_score = logits[jnp.arange(B), i, cur]
        score = score + trans_score * mask_f[:, i + 1] + emit_score * mask_f[:, i]
    last_idx = jnp.sum(mask.astype(jnp.int32), axis=1) - 1
    last_tags = tags[jnp.arange(B), last_idx]
    score = (score + end_t[last_tags]
             + logits[jnp.arange(B), S - 1, last_tags] * mask_f[:, S - 1])
    return jnp.sum(log_den - score)


if __name__ == "__main__":
    B, S, T = 2, 8, 8

    key = jax.random.PRNGKey(0)
    k_logits, k_tags, k_trans, k_start, k_end = jax.random.split(key, 5)

    # deterministic parameter init (xavier-normal-ish for transitions,
    # standard normal for start/end, mirroring reset_parameters()).
    xavier_std = (2.0 / (T + T)) ** 0.5
    transitions = jax.random.normal(k_trans, (T, T), jnp.float32) * xavier_std
    start_transitions = jax.random.normal(k_start, (T,), jnp.float32)
    end_transitions = jax.random.normal(k_end, (T,), jnp.float32)

    logits = jax.random.normal(k_logits, (B, S, T), jnp.float32)
    tags = jax.random.randint(k_tags, (B, S), 0, T, jnp.int32)
    # non-trivial mask: sequence lengths [8, 5]
    lengths = jnp.array([8, 5], jnp.int32)
    mask = (jnp.arange(S)[None, :] < lengths[:, None]).astype(jnp.int32)

    nll = crf_forward(logits, tags, mask, transitions,
                      start_transitions, end_transitions, reduction="sum")
    nll = jax.block_until_ready(nll)

    ref = _crf_forward_ref(logits, tags, mask, transitions,
                           start_transitions, end_transitions)
    assert jnp.allclose(nll, ref, rtol=1e-3, atol=1e-3), (nll, ref)

    print("KERNEL_OK")
</pallas_src>

<mosaic_0001>
module attributes {stable_mosaic.version = 11 : i64} {
  func.func @_crf_nll_kernel(%arg0: i32, %arg1: memref<8x8x128xf32, #tpu.memory_space<vmem>>, %arg2: memref<8x128xi32, #tpu.memory_space<vmem>>, %arg3: memref<8x128xf32, #tpu.memory_space<vmem>>, %arg4: memref<8x8xf32, #tpu.memory_space<vmem>>, %arg5: memref<8x1xf32, #tpu.memory_space<vmem>>, %arg6: memref<8x1xf32, #tpu.memory_space<vmem>>, %arg7: memref<1x128xf32, #tpu.memory_space<vmem>>) attributes {dimension_semantics = [#tpu.dimension_semantics<parallel>], iteration_bounds = array<i64: 1>, scalar_prefetch = 0 : i64, scratch_operands = 0 : i64, tpu.core_type = #tpu.core_type<tc>, window_params = [{transform_indices = @transform_0, window_bounds = array<i64: 8, 8, 128>}, {transform_indices = @transform_1, window_bounds = array<i64: 8, 128>}, {transform_indices = @transform_2, window_bounds = array<i64: 8, 128>}, {pipeline_mode = #tpu.pipeline_mode<synchronous>, transform_indices = @transform_3, window_bounds = array<i64: 8, 8>}, {pipeline_mode = #tpu.pipeline_mode<synchronous>, transform_indices = @transform_4, window_bounds = array<i64: 8, 1>}, {pipeline_mode = #tpu.pipeline_mode<synchronous>, transform_indices = @transform_5, window_bounds = array<i64: 8, 1>}, {transform_indices = @transform_6, window_bounds = array<i64: 1, 128>}]} {
    %c0 = arith.constant 0 : index
    %c0_0 = arith.constant 0 : index
    %0 = vector.load %arg4[%c0, %c0_0] : memref<8x8xf32, #tpu.memory_space<vmem>>, vector<8x8xf32>
    %c0_1 = arith.constant 0 : index
    %c0_2 = arith.constant 0 : index
    %1 = vector.load %arg5[%c0_1, %c0_2] : memref<8x1xf32, #tpu.memory_space<vmem>>, vector<8x1xf32>
    %c0_3 = arith.constant 0 : index
    %c0_4 = arith.constant 0 : index
    %2 = vector.load %arg6[%c0_3, %c0_4] : memref<8x1xf32, #tpu.memory_space<vmem>>, vector<8x1xf32>
    %3 = vector.shape_cast %0 : vector<8x8xf32> to vector<8x8x1xf32>
    %4 = vector.shape_cast %3 : vector<8x8x1xf32> to vector<8x8x1xf32>
    %5 = vector.broadcast %4 : vector<8x8x1xf32> to vector<8x8x128xf32>
    %6 = tpu.iota {dimensions = array<i32: 0>} : vector<8x128xi32>
    %c0_5 = arith.constant 0 : index
    %c0_6 = arith.constant 0 : index
    %c0_7 = arith.constant 0 : index
    %7 = vector.load %arg1[%c0_5, %c0_6, %c0_7] : memref<8x8x128xf32, #tpu.memory_space<vmem>>, vector<1x8x128xf32>
    %8 = vector.shape_cast %7 : vector<1x8x128xf32> to vector<8x128xf32>
    %c0_8 = arith.constant 0 : index
    %c0_9 = arith.constant 0 : index
    %9 = vector.load %arg3[%c0_8, %c0_9] : memref<8x128xf32, #tpu.memory_space<vmem>>, vector<1x128xf32>
    %c0_10 = arith.constant 0 : index
    %c0_11 = arith.constant 0 : index
    %10 = vector.load %arg2[%c0_10, %c0_11] : memref<8x128xi32, #tpu.memory_space<vmem>>, vector<1x128xi32>
    %11 = vector.broadcast %10 : vector<1x128xi32> to vector<8x128xi32>
    %12 = arith.cmpi eq, %6, %11 : vector<8x128xi32>
    %13 = arith.extui %12 : vector<8x128xi1> to vector<8x128xi32>
    %14 = arith.sitofp %13 : vector<8x128xi32> to vector<8x128xf32>
    %15 = vector.broadcast %1 : vector<8x1xf32> to vector<8x128xf32>
    %16 = arith.addf %15, %8 : vector<8x128xf32>
    %17 = vector.broadcast %1 : vector<8x1xf32> to vector<8x128xf32>
    %18 = arith.mulf %14, %17 : vector<8x128xf32>
    %cst = arith.constant dense<0.000000e+00> : vector<128xf32>
    %19 = vector.multi_reduction <add>, %18, %cst [0] : vector<8x128xf32> to vector<128xf32>
    %20 = vector.shape_cast %19 : vector<128xf32> to vector<1x128xf32>
    %c1 = arith.constant 1 : index
    %c0_12 = arith.constant 0 : index
    %c0_13 = arith.constant 0 : index
    %21 = vector.load %arg1[%c1, %c0_12, %c0_13] : memref<8x8x128xf32, #tpu.memory_space<vmem>>, vector<1x8x128xf32>
    %22 = vector.shape_cast %21 : vector<1x8x128xf32> to vector<8x128xf32>
    %c1_14 = arith.constant 1 : index
    %c0_15 = arith.constant 0 : index
    %23 = vector.load %arg3[%c1_14, %c0_15] : memref<8x128xf32, #tpu.memory_space<vmem>>, vector<1x128xf32>
    %c1_16 = arith.constant 1 : index
    %c0_17 = arith.constant 0 : index
    %24 = vector.load %arg2[%c1_16, %c0_17] : memref<8x128xi32, #tpu.memory_space<vmem>>, vector<1x128xi32>
    %25 = vector.broadcast %24 : vector<1x128xi32> to vector<8x128xi32>
    %26 = arith.cmpi eq, %6, %25 : vector<8x128xi32>
    %27 = arith.extui %26 : vector<8x128xi1> to vector<8x128xi32>
    %28 = arith.sitofp %27 : vector<8x128xi32> to vector<8x128xf32>
    %29 = vector.shape_cast %16 : vector<8x128xf32> to vector<8x1x128xf32>
    %30 = vector.broadcast %29 : vector<8x1x128xf32> to vector<8x8x128xf32>
    %31 = arith.addf %30, %5 : vector<8x8x128xf32>
    %cst_18 = arith.constant dense<0xFF800000> : vector<8x128xf32>
    %32 = vector.multi_reduction <maximumf>, %31, %cst_18 [0] : vector<8x8x128xf32> to vector<8x128xf32>
    %33 = vector.shape_cast %32 : vector<8x128xf32> to vector<1x8x128xf32>
    %34 = vector.broadcast %33 : vector<1x8x128xf32> to vector<8x8x128xf32>
    %35 = arith.subf %31, %34 : vector<8x8x128xf32>
    %36 = math.exp %35 : vector<8x8x128xf32>
    %cst_19 = arith.constant dense<0.000000e+00> : vector<8x128xf32>
    %37 = vector.multi_reduction <add>, %36, %cst_19 [0] : vector<8x8x128xf32> to vector<8x128xf32>
    %38 = math.log %37 : vector<8x128xf32>
    %39 = arith.addf %32, %38 : vector<8x128xf32>
    %40 = arith.addf %39, %22 : vector<8x128xf32>
    %41 = vector.broadcast %23 : vector<1x128xf32> to vector<8x128xf32>
    %42 = arith.mulf %40, %41 : vector<8x128xf32>
    %cst_20 = arith.constant 1.000000e+00 : f32
    %43 = vector.broadcast %cst_20 : f32 to vector<1x128xf32>
    %44 = arith.subf %43, %23 : vector<1x128xf32>
    %45 = vector.broadcast %44 : vector<1x128xf32> to vector<8x128xf32>
    %46 = arith.mulf %16, %45 : vector<8x128xf32>
    %47 = arith.addf %42, %46 : vector<8x128xf32>
    %48 = vector.shape_cast %14 : vector<8x128xf32> to vector<8x1x128xf32>
    %49 = vector.broadcast %48 : vector<8x1x128xf32> to vector<8x8x128xf32>
    %50 = arith.mulf %49, %5 : vector<8x8x128xf32>
    %cst_21 = arith.constant dense<0.000000e+00> : vector<8x128xf32>
    %51 = vector.multi_reduction <add>, %50, %cst_21 [0] : vector<8x8x128xf32> to vector<8x128xf32>
    %52 = arith.mulf %51, %28 : vector<8x128xf32>
    %cst_22 = arith.constant dense<0.000000e+00> : vector<128xf32>
    %53 = vector.multi_reduction <add>, %52, %cst_22 [0] : vector<8x128xf32> to vector<128xf32>
    %54 = vector.shape_cast %53 : vector<128xf32> to vector<1x128xf32>
    %55 = arith.mulf %8, %14 : vector<8x128xf32>
    %cst_23 = arith.constant dense<0.000000e+00> : vector<128xf32>
    %56 = vector.multi_reduction <add>, %55, %cst_23 [0] : vector<8x128xf32> to vector<128xf32>
    %57 = vector.shape_cast %56 : vector<128xf32> to vector<1x128xf32>
    %58 = arith.mulf %54, %23 : vector<1x128xf32>
    %59 = arith.addf %20, %58 : vector<1x128xf32>
    %60 = arith.mulf %57, %9 : vector<1x128xf32>
    %61 = arith.addf %59, %60 : vector<1x128xf32>
    %62 = vector.broadcast %23 : vector<1x128xf32> to vector<8x128xf32>
    %63 = arith.mulf %28, %62 : vector<8x128xf32>
    %cst_24 = arith.constant 1.000000e+00 : f32
    %64 = vector.broadcast %cst_24 : f32 to vector<1x128xf32>
    %65 = arith.subf %64, %23 : vector<1x128xf32>
    %66 = vector.broadcast %65 : vector<1x128xf32> to vector<8x128xf32>
    %67 = arith.mulf %14, %66 : vector<8x128xf32>
    %68 = arith.addf %63, %67 : vector<8x128xf32>
    %c2 = arith.constant 2 : index
    %c0_25 = arith.constant 0 : index
    %c0_26 = arith.constant 0 : index
    %69 = vector.load %arg1[%c2, %c0_25, %c0_26] : memref<8x8x128xf32, #tpu.memory_space<vmem>>, vector<1x8x128xf32>
    %70 = vector.shape_cast %69 : vector<1x8x128xf32> to vector<8x128xf32>
    %c2_27 = arith.constant 2 : index
    %c0_28 = arith.constant 0 : index
    %71 = vector.load %arg3[%c2_27, %c0_28] : memref<8x128xf32, #tpu.memory_space<vmem>>, vector<1x128xf32>
    %c2_29 = arith.constant 2 : index
    %c0_30 = arith.constant 0 : index
    %72 = vector.load %arg2[%c2_29, %c0_30] : memref<8x128xi32, #tpu.memory_space<vmem>>, vector<1x128xi32>
    %73 = vector.broadcast %72 : vector<1x128xi32> to vector<8x128xi32>
    %74 = arith.cmpi eq, %6, %73 : vector<8x128xi32>
    %75 = arith.extui %74 : vector<8x128xi1> to vector<8x128xi32>
    %76 = arith.sitofp %75 : vector<8x128xi32> to vector<8x128xf32>
    %77 = vector.shape_cast %47 : vector<8x128xf32> to vector<8x1x128xf32>
    %78 = vector.broadcast %77 : vector<8x1x128xf32> to vector<8x8x128xf32>
    %79 = arith.addf %78, %5 : vector<8x8x128xf32>
    %cst_31 = arith.constant dense<0xFF800000> : vector<8x128xf32>
    %80 = vector.multi_reduction <maximumf>, %79, %cst_31 [0] : vector<8x8x128xf32> to vector<8x128xf32>
    %81 = vector.shape_cast %80 : vector<8x128xf32> to vector<1x8x128xf32>
    %82 = vector.broadcast %81 : vector<1x8x128xf32> to vector<8x8x128xf32>
    %83 = arith.subf %79, %82 : vector<8x8x128xf32>
    %84 = math.exp %83 : vector<8x8x128xf32>
    %cst_32 = arith.constant dense<0.000000e+00> : vector<8x128xf32>
    %85 = vector.multi_reduction <add>, %84, %cst_32 [0] : vector<8x8x128xf32> to vector<8x128xf32>
    %86 = math.log %85 : vector<8x128xf32>
    %87 = arith.addf %80, %86 : vector<8x128xf32>
    %88 = arith.addf %87, %70 : vector<8x128xf32>
    %89 = vector.broadcast %71 : vector<1x128xf32> to vector<8x128xf32>
    %90 = arith.mulf %88, %89 : vector<8x128xf32>
    %cst_33 = arith.constant 1.000000e+00 : f32
    %91 = vector.broadcast %cst_33 : f32 to vector<1x128xf32>
    %92 = arith.subf %91, %71 : vector<1x128xf32>
    %93 = vector.broadcast %92 : vector<1x128xf32> to vector<8x128xf32>
    %94 = arith.mulf %47, %93 : vector<8x128xf32>
    %95 = arith.addf %90, %94 : vector<8x128xf32>
    %96 = vector.shape_cast %28 : vector<8x128xf32> to vector<8x1x128xf32>
    %97 = vector.broadcast %96 : vector<8x1x128xf32> to vector<8x8x128xf32>
    %98 = arith.mulf %97, %5 : vector<8x8x128xf32>
    %cst_34 = arith.constant dense<0.000000e+00> : vector<8x128xf32>
    %99 = vector.multi_reduction <add>, %98, %cst_34 [0] : vector<8x8x128xf32> to vector<8x128xf32>
    %100 = arith.mulf %99, %76 : vector<8x128xf32>
    %cst_35 = arith.constant dense<0.000000e+00> : vector<128xf32>
    %101 = vector.multi_reduction <add>, %100, %cst_35 [0] : vector<8x128xf32> to vector<128xf32>
    %102 = vector.shape_cast %101 : vector<128xf32> to vector<1x128xf32>
    %103 = arith.mulf %22, %28 : vector<8x128xf32>
    %cst_36 = arith.constant dense<0.000000e+00> : vector<128xf32>
    %104 = vector.multi_reduction <add>, %103, %cst_36 [0] : vector<8x128xf32> to vector<128xf32>
    %105 = vector.shape_cast %104 : vector<128xf32> to vector<1x128xf32>
    %106 = arith.mulf %102, %71 : vector<1x128xf32>
    %107 = arith.addf %61, %106 : vector<1x128xf32>
    %108 = arith.mulf %105, %23 : vector<1x128xf32>
    %109 = arith.addf %107, %108 : vector<1x128xf32>
    %110 = vector.broadcast %71 : vector<1x128xf32> to vector<8x128xf32>
    %111 = arith.mulf %76, %110 : vector<8x128xf32>
    %cst_37 = arith.constant 1.000000e+00 : f32
    %112 = vector.broadcast %cst_37 : f32 to vector<1x128xf32>
    %113 = arith.subf %112, %71 : vector<1x128xf32>
    %114 = vector.broadcast %113 : vector<1x128xf32> to vector<8x128xf32>
    %115 = arith.mulf %68, %114 : vector<8x128xf32>
    %116 = arith.addf %111, %115 : vector<8x128xf32>
    %c3 = arith.constant 3 : index
    %c0_38 = arith.constant 0 : index
    %c0_39 = arith.constant 0 : index
    %117 = vector.load %arg1[%c3, %c0_38, %c0_39] : memref<8x8x128xf32, #tpu.memory_space<vmem>>, vector<1x8x128xf32>
    %118 = vector.shape_cast %117 : vector<1x8x128xf32> to vector<8x128xf32>
    %c3_40 = arith.constant 3 : index
    %c0_41 = arith.constant 0 : index
    %119 = vector.load %arg3[%c3_40, %c0_41] : memref<8x128xf32, #tpu.memory_space<vmem>>, vector<1x128xf32>
    %c3_42 = arith.constant 3 : index
    %c0_43 = arith.constant 0 : index
    %120 = vector.load %arg2[%c3_42, %c0_43] : memref<8x128xi32, #tpu.memory_space<vmem>>, vector<1x128xi32>
    %121 = vector.broadcast %120 : vector<1x128xi32> to vector<8x128xi32>
    %122 = arith.cmpi eq, %6, %121 : vector<8x128xi32>
    %123 = arith.extui %122 : vector<8x128xi1> to vector<8x128xi32>
    %124 = arith.sitofp %123 : vector<8x128xi32> to vector<8x128xf32>
    %125 = vector.shape_cast %95 : vector<8x128xf32> to vector<8x1x128xf32>
    %126 = vector.broadcast %125 : vector<8x1x128xf32> to vector<8x8x128xf32>
    %127 = arith.addf %126, %5 : vector<8x8x128xf32>
    %cst_44 = arith.constant dense<0xFF800000> : vector<8x128xf32>
    %128 = vector.multi_reduction <maximumf>, %127, %cst_44 [0] : vector<8x8x128xf32> to vector<8x128xf32>
    %129 = vector.shape_cast %128 : vector<8x128xf32> to vector<1x8x128xf32>
    %130 = vector.broadcast %129 : vector<1x8x128xf32> to vector<8x8x128xf32>
    %131 = arith.subf %127, %130 : vector<8x8x128xf32>
    %132 = math.exp %131 : vector<8x8x128xf32>
    %cst_45 = arith.constant dense<0.000000e+00> : vector<8x128xf32>
    %133 = vector.multi_reduction <add>, %132, %cst_45 [0] : vector<8x8x128xf32> to vector<8x128xf32>
    %134 = math.log %133 : vector<8x128xf32>
    %135 = arith.addf %128, %134 : vector<8x128xf32>
    %136 = arith.addf %135, %118 : vector<8x128xf32>
    %137 = vector.broadcast %119 : vector<1x128xf32> to vector<8x128xf32>
    %138 = arith.mulf %136, %137 : vector<8x128xf32>
    %cst_46 = arith.constant 1.000000e+00 : f32
    %139 = vector.broadcast %cst_46 : f32 to vector<1x128xf32>
    %140 = arith.subf %139, %119 : vector<1x128xf32>
    %141 = vector.broadcast %140 : vector<1x128xf32> to vector<8x128xf32>
    %142 = arith.mulf %95, %141 : vector<8x128xf32>
    %143 = arith.addf %138, %142 : vector<8x128xf32>
    %144 = vector.shape_cast %76 : vector<8x128xf32> to vector<8x1x128xf32>
    %145 = vector.broadcast %144 : vector<8x1x128xf32> to vector<8x8x128xf32>
    %146 = arith.mulf %145, %5 : vector<8x8x128xf32>
    %cst_47 = arith.constant dense<0.000000e+00> : vector<8x128xf32>
    %147 = vector.multi_reduction <add>, %146, %cst_47 [0] : vector<8x8x128xf32> to vector<8x128xf32>
    %148 = arith.mulf %147, %124 : vector<8x128xf32>
    %cst_48 = arith.constant dense<0.000000e+00> : vector<128xf32>
    %149 = vector.multi_reduction <add>, %148, %cst_48 [0] : vector<8x128xf32> to vector<128xf32>
    %150 = vector.shape_cast %149 : vector<128xf32> to vector<1x128xf32>
    %151 = arith.mulf %70, %76 : vector<8x128xf32>
    %cst_49 = arith.constant dense<0.000000e+00> : vector<128xf32>
    %152 = vector.multi_reduction <add>, %151, %cst_49 [0] : vector<8x128xf32> to vector<128xf32>
    %153 = vector.shape_cast %152 : vector<128xf32> to vector<1x128xf32>
    %154 = arith.mulf %150, %119 : vector<1x128xf32>
    %155 = arith.addf %109, %154 : vector<1x128xf32>
    %156 = arith.mulf %153, %71 : vector<1x128xf32>
    %157 = arith.addf %155, %156 : vector<1x128xf32>
    %158 = vector.broadcast %119 : vector<1x128xf32> to vector<8x128xf32>
    %159 = arith.mulf %124, %158 : vector<8x128xf32>
    %cst_50 = arith.constant 1.000000e+00 : f32
    %160 = vector.broadcast %cst_50 : f32 to vector<1x128xf32>
    %161 = arith.subf %160, %119 : vector<1x128xf32>
    %162 = vector.broadcast %161 : vector<1x128xf32> to vector<8x128xf32>
    %163 = arith.mulf %116, %162 : vector<8x128xf32>
    %164 = arith.addf %159, %163 : vector<8x128xf32>
    %c4 = arith.constant 4 : index
    %c0_51 = arith.constant 0 : index
    %c0_52 = arith.constant 0 : index
    %165 = vector.load %arg1[%c4, %c0_51, %c0_52] : memref<8x8x128xf32, #tpu.memory_space<vmem>>, vector<1x8x128xf32>
    %166 = vector.shape_cast %165 : vector<1x8x128xf32> to vector<8x128xf32>
    %c4_53 = arith.constant 4 : index
    %c0_54 = arith.constant 0 : index
    %167 = vector.load %arg3[%c4_53, %c0_54] : memref<8x128xf32, #tpu.memory_space<vmem>>, vector<1x128xf32>
    %c4_55 = arith.constant 4 : index
    %c0_56 = arith.constant 0 : index
    %168 = vector.load %arg2[%c4_55, %c0_56] : memref<8x128xi32, #tpu.memory_space<vmem>>, vector<1x128xi32>
    %169 = vector.broadcast %168 : vector<1x128xi32> to vector<8x128xi32>
    %170 = arith.cmpi eq, %6, %169 : vector<8x128xi32>
    %171 = arith.extui %170 : vector<8x128xi1> to vector<8x128xi32>
    %172 = arith.sitofp %171 : vector<8x128xi32> to vector<8x128xf32>
    %173 = vector.shape_cast %143 : vector<8x128xf32> to vector<8x1x128xf32>
    %174 = vector.broadcast %173 : vector<8x1x128xf32> to vector<8x8x128xf32>
    %175 = arith.addf %174, %5 : vector<8x8x128xf32>
    %cst_57 = arith.constant dense<0xFF800000> : vector<8x128xf32>
    %176 = vector.multi_reduction <maximumf>, %175, %cst_57 [0] : vector<8x8x128xf32> to vector<8x128xf32>
    %177 = vector.shape_cast %176 : vector<8x128xf32> to vector<1x8x128xf32>
    %178 = vector.broadcast %177 : vector<1x8x128xf32> to vector<8x8x128xf32>
    %179 = arith.subf %175, %178 : vector<8x8x128xf32>
    %180 = math.exp %179 : vector<8x8x128xf32>
    %cst_58 = arith.constant dense<0.000000e+00> : vector<8x128xf32>
    %181 = vector.multi_reduction <add>, %180, %cst_58 [0] : vector<8x8x128xf32> to vector<8x128xf32>
    %182 = math.log %181 : vector<8x128xf32>
    %183 = arith.addf %176, %182 : vector<8x128xf32>
    %184 = arith.addf %183, %166 : vector<8x128xf32>
    %185 = vector.broadcast %167 : vector<1x128xf32> to vector<8x128xf32>
    %186 = arith.mulf %184, %185 : vector<8x128xf32>
    %cst_59 = arith.constant 1.000000e+00 : f32
    %187 = vector.broadcast %cst_59 : f32 to vector<1x128xf32>
    %188 = arith.subf %187, %167 : vector<1x128xf32>
    %189 = vector.broadcast %188 : vector<1x128xf32> to vector<8x128xf32>
    %190 = arith.mulf %143, %189 : vector<8x128xf32>
    %191 = arith.addf %186, %190 : vector<8x128xf32>
    %192 = vector.shape_cast %124 : vector<8x128xf32> to vector<8x1x128xf32>
    %193 = vector.broadcast %192 : vector<8x1x128xf32> to vector<8x8x128xf32>
    %194 = arith.mulf %193, %5 : vector<8x8x128xf32>
    %cst_60 = arith.constant dense<0.000000e+00> : vector<8x128xf32>
    %195 = vector.multi_reduction <add>, %194, %cst_60 [0] : vector<8x8x128xf32> to vector<8x128xf32>
    %196 = arith.mulf %195, %172 : vector<8x128xf32>
    %cst_61 = arith.constant dense<0.000000e+00> : vector<128xf32>
    %197 = vector.multi_reduction <add>, %196, %cst_61 [0] : vector<8x128xf32> to vector<128xf32>
    %198 = vector.shape_cast %197 : vector<128xf32> to vector<1x128xf32>
    %199 = arith.mulf %118, %124 : vector<8x128xf32>
    %cst_62 = arith.constant dense<0.000000e+00> : vector<128xf32>
    %200 = vector.multi_reduction <add>, %199, %cst_62 [0] : vector<8x128xf32> to vector<128xf32>
    %201 = vector.shape_cast %200 : vector<128xf32> to vector<1x128xf32>
    %202 = arith.mulf %198, %167 : vector<1x128xf32>
    %203 = arith.addf %157, %202 : vector<1x128xf32>
    %204 = arith.mulf %201, %119 : vector<1x128xf32>
    %205 = arith.addf %203, %204 : vector<1x128xf32>
    %206 = vector.broadcast %167 : vector<1x128xf32> to vector<8x128xf32>
    %207 = arith.mulf %172, %206 : vector<8x128xf32>
    %cst_63 = arith.constant 1.000000e+00 : f32
    %208 = vector.broadcast %cst_63 : f32 to vector<1x128xf32>
    %209 = arith.subf %208, %167 : vector<1x128xf32>
    %210 = vector.broadcast %209 : vector<1x128xf32> to vector<8x128xf32>
    %211 = arith.mulf %164, %210 : vector<8x128xf32>
    %212 = arith.addf %207, %211 : vector<8x128xf32>
    %c5 = arith.constant 5 : index
    %c0_64 = arith.constant 0 : index
    %c0_65 = arith.constant 0 : index
    %213 = vector.load %arg1[%c5, %c0_64, %c0_65] : memref<8x8x128xf32, #tpu.memory_space<vmem>>, vector<1x8x128xf32>
    %214 = vector.shape_cast %213 : vector<1x8x128xf32> to vector<8x128xf32>
    %c5_66 = arith.constant 5 : index
    %c0_67 = arith.constant 0 : index
    %215 = vector.load %arg3[%c5_66, %c0_67] : memref<8x128xf32, #tpu.memory_space<vmem>>, vector<1x128xf32>
    %c5_68 = arith.constant 5 : index
    %c0_69 = arith.constant 0 : index
    %216 = vector.load %arg2[%c5_68, %c0_69] : memref<8x128xi32, #tpu.memory_space<vmem>>, vector<1x128xi32>
    %217 = vector.broadcast %216 : vector<1x128xi32> to vector<8x128xi32>
    %218 = arith.cmpi eq, %6, %217 : vector<8x128xi32>
    %219 = arith.extui %218 : vector<8x128xi1> to vector<8x128xi32>
    %220 = arith.sitofp %219 : vector<8x128xi32> to vector<8x128xf32>
    %221 = vector.shape_cast %191 : vector<8x128xf32> to vector<8x1x128xf32>
    %222 = vector.broadcast %221 : vector<8x1x128xf32> to vector<8x8x128xf32>
    %223 = arith.addf %222, %5 : vector<8x8x128xf32>
    %cst_70 = arith.constant dense<0xFF800000> : vector<8x128xf32>
    %224 = vector.multi_reduction <maximumf>, %223, %cst_70 [0] : vector<8x8x128xf32> to vector<8x128xf32>
    %225 = vector.shape_cast %224 : vector<8x128xf32> to vector<1x8x128xf32>
    %226 = vector.broadcast %225 : vector<1x8x128xf32> to vector<8x8x128xf32>
    %227 = arith.subf %223, %226 : vector<8x8x128xf32>
    %228 = math.exp %227 : vector<8x8x128xf32>
    %cst_71 = arith.constant dense<0.000000e+00> : vector<8x128xf32>
    %229 = vector.multi_reduction <add>, %228, %cst_71 [0] : vector<8x8x128xf32> to vector<8x128xf32>
    %230 = math.log %229 : vector<8x128xf32>
    %231 = arith.addf %224, %230 : vector<8x128xf32>
    %232 = arith.addf %231, %214 : vector<8x128xf32>
    %233 = vector.broadcast %215 : vector<1x128xf32> to vector<8x128xf32>
    %234 = arith.mulf %232, %233 : vector<8x128xf32>
    %cst_72 = arith.constant 1.000000e+00 : f32
    %235 = vector.broadcast %cst_72 : f32 to vector<1x128xf32>
    %236 = arith.subf %235, %215 : vector<1x128xf32>
    %237 = vector.broadcast %236 : vector<1x128xf32> to vector<8x128xf32>
    %238 = arith.mulf %191, %237 : vector<8x128xf32>
    %239 = arith.addf %234, %238 : vector<8x128xf32>
    %240 = vector.shape_cast %172 : vector<8x128xf32> to vector<8x1x128xf32>
    %241 = vector.broadcast %240 : vector<8x1x128xf32> to vector<8x8x128xf32>
    %242 = arith.mulf %241, %5 : vector<8x8x128xf32>
    %cst_73 = arith.constant dense<0.000000e+00> : vector<8x128xf32>
    %243 = vector.multi_reduction <add>, %242, %cst_73 [0] : vector<8x8x128xf32> to vector<8x128xf32>
    %244 = arith.mulf %243, %220 : vector<8x128xf32>
    %cst_74 = arith.constant dense<0.000000e+00> : vector<128xf32>
    %245 = vector.multi_reduction <add>, %244, %cst_74 [0] : vector<8x128xf32> to vector<128xf32>
    %246 = vector.shape_cast %245 : vector<128xf32> to vector<1x128xf32>
    %247 = arith.mulf %166, %172 : vector<8x128xf32>
    %cst_75 = arith.constant dense<0.000000e+00> : vector<128xf32>
    %248 = vector.multi_reduction <add>, %247, %cst_75 [0] : vector<8x128xf32> to vector<128xf32>
    %249 = vector.shape_cast %248 : vector<128xf32> to vector<1x128xf32>
    %250 = arith.mulf %246, %215 : vector<1x128xf32>
    %251 = arith.addf %205, %250 : vector<1x128xf32>
    %252 = arith.mulf %249, %167 : vector<1x128xf32>
    %253 = arith.addf %251, %252 : vector<1x128xf32>
    %254 = vector.broadcast %215 : vector<1x128xf32> to vector<8x128xf32>
    %255 = arith.mulf %220, %254 : vector<8x128xf32>
    %cst_76 = arith.constant 1.000000e+00 : f32
    %256 = vector.broadcast %cst_76 : f32 to vector<1x128xf32>
    %257 = arith.subf %256, %215 : vector<1x128xf32>
    %258 = vector.broadcast %257 : vector<1x128xf32> to vector<8x128xf32>
    %259 = arith.mulf %212, %258 : vector<8x128xf32>
    %260 = arith.addf %255, %259 : vector<8x128xf32>
    %c6 = arith.constant 6 : index
    %c0_77 = arith.constant 0 : index
    %c0_78 = arith.constant 0 : index
    %261 = vector.load %arg1[%c6, %c0_77, %c0_78] : memref<8x8x128xf32, #tpu.memory_space<vmem>>, vector<1x8x128xf32>
    %262 = vector.shape_cast %261 : vector<1x8x128xf32> to vector<8x128xf32>
    %c6_79 = arith.constant 6 : index
    %c0_80 = arith.constant 0 : index
    %263 = vector.load %arg3[%c6_79, %c0_80] : memref<8x128xf32, #tpu.memory_space<vmem>>, vector<1x128xf32>
    %c6_81 = arith.constant 6 : index
    %c0_82 = arith.constant 0 : index
    %264 = vector.load %arg2[%c6_81, %c0_82] : memref<8x128xi32, #tpu.memory_space<vmem>>, vector<1x128xi32>
    %265 = vector.broadcast %264 : vector<1x128xi32> to vector<8x128xi32>
    %266 = arith.cmpi eq, %6, %265 : vector<8x128xi32>
    %267 = arith.extui %266 : vector<8x128xi1> to vector<8x128xi32>
    %268 = arith.sitofp %267 : vector<8x128xi32> to vector<8x128xf32>
    %269 = vector.shape_cast %239 : vector<8x128xf32> to vector<8x1x128xf32>
    %270 = vector.broadcast %269 : vector<8x1x128xf32> to vector<8x8x128xf32>
    %271 = arith.addf %270, %5 : vector<8x8x128xf32>
    %cst_83 = arith.constant dense<0xFF800000> : vector<8x128xf32>
    %272 = vector.multi_reduction <maximumf>, %271, %cst_83 [0] : vector<8x8x128xf32> to vector<8x128xf32>
    %273 = vector.shape_cast %272 : vector<8x128xf32> to vector<1x8x128xf32>
    %274 = vector.broadcast %273 : vector<1x8x128xf32> to vector<8x8x128xf32>
    %275 = arith.subf %271, %274 : vector<8x8x128xf32>
    %276 = math.exp %275 : vector<8x8x128xf32>
    %cst_84 = arith.constant dense<0.000000e+00> : vector<8x128xf32>
    %277 = vector.multi_reduction <add>, %276, %cst_84 [0] : vector<8x8x128xf32> to vector<8x128xf32>
    %278 = math.log %277 : vector<8x128xf32>
    %279 = arith.addf %272, %278 : vector<8x128xf32>
    %280 = arith.addf %279, %262 : vector<8x128xf32>
    %281 = vector.broadcast %263 : vector<1x128xf32> to vector<8x128xf32>
    %282 = arith.mulf %280, %281 : vector<8x128xf32>
    %cst_85 = arith.constant 1.000000e+00 : f32
    %283 = vector.broadcast %cst_85 : f32 to vector<1x128xf32>
    %284 = arith.subf %283, %263 : vector<1x128xf32>
    %285 = vector.broadcast %284 : vector<1x128xf32> to vector<8x128xf32>
    %286 = arith.mulf %239, %285 : vector<8x128xf32>
    %287 = arith.addf %282, %286 : vector<8x128xf32>
    %288 = vector.shape_cast %220 : vector<8x128xf32> to vector<8x1x128xf32>
    %289 = vector.broadcast %288 : vector<8x1x128xf32> to vector<8x8x128xf32>
    %290 = arith.mulf %289, %5 : vector<8x8x128xf32>
    %cst_86 = arith.constant dense<0.000000e+00> : vector<8x128xf32>
    %291 = vector.multi_reduction <add>, %290, %cst_86 [0] : vector<8x8x128xf32> to vector<8x128xf32>
    %292 = arith.mulf %291, %268 : vector<8x128xf32>
    %cst_87 = arith.constant dense<0.000000e+00> : vector<128xf32>
    %293 = vector.multi_reduction <add>, %292, %cst_87 [0] : vector<8x128xf32> to vector<128xf32>
    %294 = vector.shape_cast %293 : vector<128xf32> to vector<1x128xf32>
    %295 = arith.mulf %214, %220 : vector<8x128xf32>
    %cst_88 = arith.constant dense<0.000000e+00> : vector<128xf32>
    %296 = vector.multi_reduction <add>, %295, %cst_88 [0] : vector<8x128xf32> to vector<128xf32>
    %297 = vector.shape_cast %296 : vector<128xf32> to vector<1x128xf32>
    %298 = arith.mulf %294, %263 : vector<1x128xf32>
    %299 = arith.addf %253, %298 : vector<1x128xf32>
    %300 = arith.mulf %297, %215 : vector<1x128xf32>
    %301 = arith.addf %299, %300 : vector<1x128xf32>
    %302 = vector.broadcast %263 : vector<1x128xf32> to vector<8x128xf32>
    %303 = arith.mulf %268, %302 : vector<8x128xf32>
    %cst_89 = arith.constant 1.000000e+00 : f32
    %304 = vector.broadcast %cst_89 : f32 to vector<1x128xf32>
    %305 = arith.subf %304, %263 : vector<1x128xf32>
    %306 = vector.broadcast %305 : vector<1x128xf32> to vector<8x128xf32>
    %307 = arith.mulf %260, %306 : vector<8x128xf32>
    %308 = arith.addf %303, %307 : vector<8x128xf32>
    %c7 = arith.constant 7 : index
    %c0_90 = arith.constant 0 : index
    %c0_91 = arith.constant 0 : index
    %309 = vector.load %arg1[%c7, %c0_90, %c0_91] : memref<8x8x128xf32, #tpu.memory_space<vmem>>, vector<1x8x128xf32>
    %310 = vector.shape_cast %309 : vector<1x8x128xf32> to vector<8x128xf32>
    %c7_92 = arith.constant 7 : index
    %c0_93 = arith.constant 0 : index
    %311 = vector.load %arg3[%c7_92, %c0_93] : memref<8x128xf32, #tpu.memory_space<vmem>>, vector<1x128xf32>
    %c7_94 = arith.constant 7 : index
    %c0_95 = arith.constant 0 : index
    %312 = vector.load %arg2[%c7_94, %c0_95] : memref<8x128xi32, #tpu.memory_space<vmem>>, vector<1x128xi32>
    %313 = vector.broadcast %312 : vector<1x128xi32> to vector<8x128xi32>
    %314 = arith.cmpi eq, %6, %313 : vector<8x128xi32>
    %315 = arith.extui %314 : vector<8x128xi1> to vector<8x128xi32>
    %316 = arith.sitofp %315 : vector<8x128xi32> to vector<8x128xf32>
    %317 = vector.shape_cast %287 : vector<8x128xf32> to vector<8x1x128xf32>
    %318 = vector.broadcast %317 : vector<8x1x128xf32> to vector<8x8x128xf32>
    %319 = arith.addf %318, %5 : vector<8x8x128xf32>
    %cst_96 = arith.constant dense<0xFF800000> : vector<8x128xf32>
    %320 = vector.multi_reduction <maximumf>, %319, %cst_96 [0] : vector<8x8x128xf32> to vector<8x128xf32>
    %321 = vector.shape_cast %320 : vector<8x128xf32> to vector<1x8x128xf32>
    %322 = vector.broadcast %321 : vector<1x8x128xf32> to vector<8x8x128xf32>
    %323 = arith.subf %319, %322 : vector<8x8x128xf32>
    %324 = math.exp %323 : vector<8x8x128xf32>
    %cst_97 = arith.constant dense<0.000000e+00> : vector<8x128xf32>
    %325 = vector.multi_reduction <add>, %324, %cst_97 [0] : vector<8x8x128xf32> to vector<8x128xf32>
    %326 = math.log %325 : vector<8x128xf32>
    %327 = arith.addf %320, %326 : vector<8x128xf32>
    %328 = arith.addf %327, %310 : vector<8x128xf32>
    %329 = vector.broadcast %311 : vector<1x128xf32> to vector<8x128xf32>
    %330 = arith.mulf %328, %329 : vector<8x128xf32>
    %cst_98 = arith.constant 1.000000e+00 : f32
    %331 = vector.broadcast %cst_98 : f32 to vector<1x128xf32>
    %332 = arith.subf %331, %311 : vector<1x128xf32>
    %333 = vector.broadcast %332 : vector<1x128xf32> to vector<8x128xf32>
    %334 = arith.mulf %287, %333 : vector<8x128xf32>
    %335 = arith.addf %330, %334 : vector<8x128xf32>
    %336 = vector.shape_cast %268 : vector<8x128xf32> to vector<8x1x128xf32>
    %337 = vector.broadcast %336 : vector<8x1x128xf32> to vector<8x8x128xf32>
    %338 = arith.mulf %337, %5 : vector<8x8x128xf32>
    %cst_99 = arith.constant dense<0.000000e+00> : vector<8x128xf32>
    %339 = vector.multi_reduction <add>, %338, %cst_99 [0] : vector<8x8x128xf32> to vector<8x128xf32>
    %340 = arith.mulf %339, %316 : vector<8x128xf32>
    %cst_100 = arith.constant dense<0.000000e+00> : vector<128xf32>
    %341 = vector.multi_reduction <add>, %340, %cst_100 [0] : vector<8x128xf32> to vector<128xf32>
    %342 = vector.shape_cast %341 : vector<128xf32> to vector<1x128xf32>
    %343 = arith.mulf %262, %268 : vector<8x128xf32>
    %cst_101 = arith.constant dense<0.000000e+00> : vector<128xf32>
    %344 = vector.multi_reduction <add>, %343, %cst_101 [0] : vector<8x128xf32> to vector<128xf32>
    %345 = vector.shape_cast %344 : vector<128xf32> to vector<1x128xf32>
    %346 = arith.mulf %342, %311 : vector<1x128xf32>
    %347 = arith.addf %301, %346 : vector<1x128xf32>
    %348 = arith.mulf %345, %263 : vector<1x128xf32>
    %349 = arith.addf %347, %348 : vector<1x128xf32>
    %350 = vector.broadcast %311 : vector<1x128xf32> to vector<8x128xf32>
    %351 = arith.mulf %316, %350 : vector<8x128xf32>
    %cst_102 = arith.constant 1.000000e+00 : f32
    %352 = vector.broadcast %cst_102 : f32 to vector<1x128xf32>
    %353 = arith.subf %352, %311 : vector<1x128xf32>
    %354 = vector.broadcast %353 : vector<1x128xf32> to vector<8x128xf32>
    %355 = arith.mulf %308, %354 : vector<8x128xf32>
    %356 = arith.addf %351, %355 : vector<8x128xf32>
    %357 = vector.broadcast %2 : vector<8x1xf32> to vector<8x128xf32>
    %358 = arith.addf %335, %357 : vector<8x128xf32>
    %cst_103 = arith.constant dense<0xFF800000> : vector<128xf32>
    %359 = vector.multi_reduction <maximumf>, %358, %cst_103 [0] : vector<8x128xf32> to vector<128xf32>
    %360 = vector.shape_cast %359 : vector<128xf32> to vector<1x128xf32>
    %361 = vector.broadcast %360 : vector<1x128xf32> to vector<8x128xf32>
    %362 = arith.subf %358, %361 : vector<8x128xf32>
    %363 = math.exp %362 : vector<8x128xf32>
    %cst_104 = arith.constant dense<0.000000e+00> : vector<128xf32>
    %364 = vector.multi_reduction <add>, %363, %cst_104 [0] : vector<8x128xf32> to vector<128xf32>
    %365 = vector.shape_cast %364 : vector<128xf32> to vector<1x128xf32>
    %366 = math.log %365 : vector<1x128xf32>
    %367 = arith.addf %360, %366 : vector<1x128xf32>
    %368 = vector.broadcast %2 : vector<8x1xf32> to vector<8x128xf32>
    %369 = arith.mulf %356, %368 : vector<8x128xf32>
    %cst_105 = arith.constant dense<0.000000e+00> : vector<128xf32>
    %370 = vector.multi_reduction <add>, %369, %cst_105 [0] : vector<8x128xf32> to vector<128xf32>
    %371 = vector.shape_cast %370 : vector<128xf32> to vector<1x128xf32>
    %372 = arith.mulf %310, %356 : vector<8x128xf32>
    %cst_106 = arith.constant dense<0.000000e+00> : vector<128xf32>
    %373 = vector.multi_reduction <add>, %372, %cst_106 [0] : vector<8x128xf32> to vector<128xf32>
    %374 = vector.shape_cast %373 : vector<128xf32> to vector<1x128xf32>
    %375 = arith.addf %349, %371 : vector<1x128xf32>
    %376 = arith.mulf %374, %311 : vector<1x128xf32>
    %377 = arith.addf %375, %376 : vector<1x128xf32>
    %378 = arith.subf %367, %377 : vector<1x128xf32>
    %c0_107 = arith.constant 0 : index
    %c0_108 = arith.constant 0 : index
    %379 = vector.load %arg7[%c0_107, %c0_108] : memref<1x128xf32, #tpu.memory_space<vmem>>, vector<1x128xf32>
    tpu.vector_store %arg7[%c0_107, %c0_108], %378 {strides = array<i32>} : memref<1x128xf32, #tpu.memory_space<vmem>>, vector<1x128xf32>,
    return
  }
  func.func @transform_0(%arg0: i32) -> (i32, i32, i32) {
    %c0_i32 = arith.constant 0 : i32
    %c0_i32_0 = arith.constant 0 : i32
    %c0_i32_1 = arith.constant 0 : i32
    return %c0_i32, %c0_i32_0, %arg0 : i32, i32, i32
  }
  func.func @transform_1(%arg0: i32) -> (i32, i32) {
    %c0_i32 = arith.constant 0 : i32
    %c0_i32_0 = arith.constant 0 : i32
    return %c0_i32, %arg0 : i32, i32
  }
  func.func @transform_2(%arg0: i32) -> (i32, i32) {
    %c0_i32 = arith.constant 0 : i32
    %c0_i32_0 = arith.constant 0 : i32
    return %c0_i32, %arg0 : i32, i32
  }
  func.func @transform_3(%arg0: i32) -> (i32, i32) {
    %c0_i32 = arith.constant 0 : i32
    %c0_i32_0 = arith.constant 0 : i32
    %c0_i32_1 = arith.constant 0 : i32
    return %c0_i32, %c0_i32_0 : i32, i32
  }
  func.func @transform_4(%arg0: i32) -> (i32, i32) {
    %c0_i32 = arith.constant 0 : i32
    %c0_i32_0 = arith.constant 0 : i32
    %c0_i32_1 = arith.constant 0 : i32
    return %c0_i32, %c0_i32_0 : i32, i32
  }
  func.func @transform_5(%arg0: i32) -> (i32, i32) {
    %c0_i32 = arith.constant 0 : i32
    %c0_i32_0 = arith.constant 0 : i32
    %c0_i32_1 = arith.constant 0 : i32
    return %c0_i32, %c0_i32_0 : i32, i32
  }
  func.func @transform_6(%arg0: i32) -> (i32, i32) {
    %c0_i32 = arith.constant 0 : i32
    %c0_i32_0 = arith.constant 0 : i32
    return %c0_i32, %arg0 : i32, i32
  }
}

</mosaic_0001>

<bundles_post_ra>
// kernel: crf_forward.1
= control target key start
LH: loop header
LB: loop body
LE: loop exit
PB: predicated region body
PF: predicated region fallthrough
CT: control target
= control target key end

     0   :  { %v26_v0 = vlaneseq  ;;  %v2342_v1 = vmov 0   ;;  %v2343_v22 = vmov 1966171168   ;;  %v3478_v28 = vmov 0.0   ;;  %s3471_s4 = inlined_call_operand.vmem [shape: f32[8,1], index: 4, kind: input, shape index: {}]   ;;  %s3472_s3 = inlined_call_operand.vmem [shape: f32[8,8], index: 3, kind: input, shape index: {}]   ;;  %s3473_s5 = inlined_call_operand.vmem [shape: f32[8,1], index: 5, kind: input, shape index: {}]   ;;  %s3474_s1 = inlined_call_operand.vmem [shape: s32[8,128], index: 1, kind: input, shape index: {}]   ;;  %s3475_s0 = inlined_call_operand.vmem [shape: f32[8,8,128], index: 0, kind: input, shape index: {}]   ;;  %s3476_s2 = inlined_call_operand.vmem [shape: f32[8,128], index: 2, kind: input, shape index: {}]   ;;  %s3477_s6 = inlined_call_operand.vmem [shape: f32[1,128], index: 6, kind: output, shape index: {}]  }
   0x1   :  { %2203 = vset.pattern.permute.xlu0 %v2342_v1  ;;  %v24_v2 = vld [vmem:[%s3471_s4] sm:$0xff]  ;;  %2204 = vset.pattern.permute.xlu1 %v2342_v1  ;;  %v121_v23 = vunpack.c.l.s4 %v2343_v22  ;;  %v2179_v41 = vld [vmem:[%s3475_s0 + $0x8] sm:$0xff] }
   0x2   :  { %96 = vperm.xlu0 %2203, %v24_v2   ;;  %v2383_v3 = vshrl.u32 %v26_v0, 7  ;;  %v23_v4 = vld [vmem:[%s3472_s3] sm:$0xff] }
   0x3   :  { %v25_v21 = vld [vmem:[%s3473_s5] sm:$0xff]  ;;  %v122_v25 = vunpack.c.0.s8 %v121_v23 }
   0x4   :  { %v2389_v5 = vsub.s32 0, %v2383_v3  ;;  %v35_v6 = vsub.s32 1, %v2383_v3  ;;  %v42_v7 = vsub.s32 2, %v2383_v3  ;;  %v49_v8 = vsub.s32 3, %v2383_v3  ;;  %v2177_v24 = vld [vmem:[%s3474_s1] ss:$0 sm:$0xff] }
   0x5   :  { %v56_v12 = vsub.s32 4, %v2383_v3  ;;  %v63_v14 = vsub.s32 5, %v2383_v3  ;;  %v70_v16 = vsub.s32 6, %v2383_v3  ;;  %v77_v18 = vsub.s32 7, %v2383_v3  ;;  %v2412_v27 = vld [vmem:[%s3475_s0] sm:$0xff] }
   0x6   :  { %v36_v9 = vrot.slane %v23_v4, %v35_v6  ;;  %v29_v10 = vrot.slane %v23_v4, %v2389_v5  ;;  %v43_v11 = vrot.slane %v23_v4, %v42_v7  ;;  %v50_v13 = vrot.slane %v23_v4, %v49_v8  ;;  %v2180_v30 = vld [vmem:[%s3474_s1 + $0x1] ss:$0 sm:$0xff]  ;;  %v2183_v33 = vld [vmem:[%s3474_s1 + $0x2] ss:$0 sm:$0xff]  ;;  %v2186_v37 = vld [vmem:[%s3474_s1 + $0x3] ss:$0 sm:$0xff] }
   0x7   :  { %v57_v15 = vrot.slane %v23_v4, %v56_v12  ;;  %v64_v17 = vrot.slane %v23_v4, %v63_v14  ;;  %v71_v19 = vrot.slane %v23_v4, %v70_v16  ;;  %v78_v20 = vrot.slane %v23_v4, %v77_v18  ;;  %v2430_v34 = vld [vmem:[%s3476_s2 + $0x1] sm:$0x1]  ;;  %v2458_v46 = vld [vmem:[%s3476_s2 + $0x2] sm:$0x1]  ;;  %v2182_v4 = vld [vmem:[%s3475_s0 + $0x10] sm:$0xff] }
   0x8   :  { %38 = vbcast.lane.b32.xlu1 %v36_v9, 256  ;;  %31 = vbcast.lane.b32.xlu0 %v29_v10, 256  ;;  %vm91_vm0 = vcmp.eq.s32.totalorder %v2383_v3, %v2177_v24  ;;  %v2407_v26 = vsub.s32 %v122_v25, %v2383_v3  ;;  %3528 = vst [vmem:[#allocation2_spill] sm:$0xff] %v2430_v34  ;;  %v263_v39 = vsub.f32 1.0, %v2430_v34  ;;  %3532 = vst [vmem:[#allocation6_spill] sm:$0xff] %v2458_v46 }
   0x9   :  { %v2415_v29 = vsel %vm91_vm0, 1.0, %v3478_v28  ;;  %vm115_vm1 = vcmp.eq.s32.totalorder %v2383_v3, %v2180_v30  ;;  %vm404_vm2 = vcmp.eq.s32.totalorder %v2383_v3, %v2183_v33  ;;  %v2449_v42 = vrot.slane %v2430_v34, %v2389_v5  ;;  %v2524_v18 = vld [vmem:[%s3476_s2 + $0x3] sm:$0x1] }
   0xa   :  { %v382_v31 = vmul.f32 %v2415_v29, %v2412_v27  ;;  %v271_v32 = vcombine.high %v2415_v29, %v2415_v29  ;;  %v278_v35 = vrot.slane %v2415_v29, %v2407_v26  ;;  %v2440_v38 = vsel %vm115_vm1, 1.0, %v3478_v28  ;;  %3537 = vst [vmem:[#allocation11_spill] sm:$0xff] %v2524_v18 }
   0xb   :  { %3529 = vst [vmem:[#allocation3_spill] sm:$0xff] %v2440_v38  ;;  %3530 = vst [vmem:[#allocation4_spill] sm:$0xff] %v2449_v42  ;;  %v2452_v44 = vsel %vm404_vm2, 1.0, %v3478_v28  ;;  %vm693_vm3 = vcmp.eq.s32.totalorder %v2383_v3, %v2186_v37  ;;  %v560_v47 = vcombine.high %v2440_v38, %v2440_v38  ;;  %v567_v48 = vrot.slane %v2440_v38, %v2407_v26 }
   0xc   :  { %45 = vbcast.lane.b32.xlu1 %v43_v11, 256  ;;  %52 = vbcast.lane.b32.xlu0 %v50_v13, 256  ;;  %v383_v36 = vrot.slane %v382_v31, 4  ;;  %v285_v40 = vrot.slane %v271_v32, %v2407_v26  ;;  %v286_v43 = vcombine.high %v278_v35, %v278_v35  ;;  %3531 = vst [vmem:[#allocation5_spill] sm:$0xff] %v2452_v44  ;;  %v2478_v55 = vsel %vm693_vm3, 1.0, %v3478_v28 }
   0xd   :  { %v2465_v49 = vrot.slane %v263_v39, %v2389_v5  ;;  %v2468_v51 = vrot.slane %v278_v35, %v2407_v26  ;;  %v671_v52 = vmul.f32 %v2440_v38, %v2179_v41  ;;  %v849_v53 = vcombine.high %v2452_v44, %v2452_v44  ;;  %3534 = vst [vmem:[#allocation8_spill] sm:$0xff] %v2478_v55 }
   0xe   :  { %v384_v45 = vadd.f32 %v383_v36, %v382_v31  ;;  %v287_v50 = vcombine.high %v285_v40, %v285_v40  ;;  %v2475_v54 = vrot.slane %v2452_v44, %v2407_v26  ;;  %v2481_v56 = vrot.slane %v286_v43, %v2407_v26 }
   0xf   :  { %3533 = vst [vmem:[#allocation7_spill] sm:$0xff] %v2465_v49  ;;  %v393_v57 = vmul.f32 %v2440_v38, %v2449_v42  ;;  %v394_v58 = vmul.f32 %v2415_v29, %v2465_v49  ;;  %v552_v59 = vsub.f32 1.0, %v2458_v46  ;;  %v2489_v60 = vrot.slane %v285_v40, %v2407_v26 }
  0x10   :  { %59 = vbcast.lane.b32.xlu1 %v57_v15, 256  ;;  %66 = vbcast.lane.b32.xlu0 %v64_v17, 256  ;;  %v385_v61 = vrot.slane %v384_v45, 2  ;;  %v574_v62 = vrot.slane %v560_v47, %v2407_v26  ;;  %v575_v63 = vcombine.high %v567_v48, %v567_v48  ;;  %v2493_v0 = vrot.slane %v287_v50, %v2407_v26 }
  0x11   :  { %v316_v1 = vcombine.high %v2468_v51, %v2468_v51  ;;  %v318_v2 = vcombine.high %v2481_v56, %v2481_v56  ;;  %v2503_v6 = vrot.slane %v567_v48, %v2407_v26  ;;  %v317_v7 = vcombine.high %v2489_v60, %v2489_v60 }
  0x12   :  { %v672_v9 = vrot.slane %v671_v52, 4  ;;  %v863_v10 = vrot.slane %v849_v53, %v2407_v26  ;;  %v319_v11 = vcombine.high %v2493_v0, %v2493_v0  ;;  %v395_v12 = vadd.f32 %v394_v58, %v393_v57 }
  0x13   :  { %v2514_v13 = vrot.slane %v2458_v46, %v2389_v5  ;;  %v2517_v14 = vrot.slane %v552_v59, %v2389_v5  ;;  %v386_v16 = vadd.f32 %v385_v61, %v384_v45  ;;  %v576_v17 = vcombine.high %v574_v62, %v574_v62 }
  0x14   :  { %73 = vbcast.lane.b32.xlu1 %v71_v19, 256  ;;  %80 = vbcast.lane.b32.xlu0 %v78_v20, 256  ;;  %v960_v19 = vmul.f32 %v2452_v44, %v2182_v4  ;;  %v2528_v20 = vrot.slane %v316_v1, %v2389_v5  ;;  %v2536_v23 = vrot.slane %v574_v62, %v2407_v26  ;;  %v841_v36 = vsub.f32 1.0, %v2524_v18 }
  0x15   :  { %3535 = vst [vmem:[#allocation9_spill] sm:$0xff] %v2514_v13  ;;  %3536 = vst [vmem:[#allocation10_spill] sm:$0xff] %v2517_v14  ;;  %v2541_v25 = vrot.slane %v317_v7, %v2389_v5  ;;  %v2544_v30 = vrot.slane %v575_v63, %v2407_v26  ;;  %v673_v31 = vadd.f32 %v672_v9, %v671_v52  ;;  %v387_v37 = vrot.slane %v386_v16, 1  ;;  %v2589_v7 = vld [vmem:[%s3476_s2 + $0x4] sm:$0x1] }
  0x16   :  { %v2547_v32 = vrot.slane %v319_v11, %v2389_v5  ;;  %v682_v33 = vmul.f32 %v2452_v44, %v2514_v13  ;;  %v683_v35 = vmul.f32 %v2517_v14, %v395_v12  ;;  %v2554_v39 = vrot.slane %v576_v17, %v2407_v26  ;;  %3540 = vst [vmem:[#allocation14_spill] sm:$0xff] %v2589_v7  ;;  %v2188_v14 = vld [vmem:[%s3475_s0 + $0x20] sm:$0xff] }
  0x17   :  { %v605_v40 = vcombine.high %v2503_v6, %v2503_v6  ;;  %v961_v41 = vrot.slane %v960_v19, 4  ;;  %v606_v43 = vcombine.high %v2536_v23, %v2536_v23  ;;  %v607_v45 = vcombine.high %v2544_v30, %v2544_v30 }
  0x18   :  { %2132 = vperm.xlu1 %2204, %v25_v21   ;;  %v2531_v21 = vrot.slane %v318_v2, %v2389_v5  ;;  %v608_v50 = vcombine.high %v2554_v39, %v2554_v39  ;;  %v674_v53 = vrot.slane %v673_v31, 2  ;;  %v864_v57 = vcombine.high %v2475_v54, %v2475_v54 }
  0x19   :  { %v684_v58 = vadd.f32 %v683_v35, %v682_v33  ;;  %v2573_v59 = vrot.slane %v841_v36, %v2389_v5  ;;  %v2577_v61 = vrot.slane %v2475_v54, %v2407_v26  ;;  %v2581_v62 = vrot.slane %v2524_v18, %v2389_v5  ;;  %v85_v54 = vld [vmem:[%s3476_s2] sm:$0x1]  ;;  %v2189_v36 = vld [vmem:[%s3474_s1 + $0x4] ss:$0 sm:$0xff] }
  0x1a   :  { %v388_v63 = vadd.f32 %v387_v37, %v386_v16  ;;  %v2584_v1 = vrot.slane %v605_v40, %v2389_v5  ;;  %v865_v2 = vcombine.high %v863_v10, %v863_v10  ;;  %v962_v4 = vadd.f32 %v961_v41, %v960_v19 }
  0x1b   :  { %3538 = vst [vmem:[#allocation12_spill] sm:$0xff] %v2573_v59  ;;  %3539 = vst [vmem:[#allocation13_spill] sm:$0xff] %v2581_v62  ;;  %v2595_v9 = vrot.slane %v607_v45, %v2389_v5  ;;  %v2600_v12 = vrot.slane %v606_v43, %v2389_v5  ;;  %v1138_v16 = vcombine.high %v2478_v55, %v2478_v55 }
  0x1c   :  { %v2605_v17 = vrot.slane %v608_v50, %v2389_v5  ;;  %v675_v19 = vadd.f32 %v674_v53, %v673_v31  ;;  %v2608_v33 = vrot.slane %v863_v10, %v2407_v26  ;;  %v2611_v35 = vrot.slane %v864_v57, %v2407_v26 }
  0x1d   :  { %v894_v37 = vcombine.high %v2577_v61, %v2577_v61  ;;  %v972_v40 = vmul.f32 %v2573_v59, %v684_v58  ;;  %v971_v41 = vmul.f32 %v2478_v55, %v2581_v62  ;;  %v1130_v31 = vsub.f32 1.0, %v2589_v7  ;;  %v2195_v62 = vld [vmem:[%s3474_s1 + $0x6] ss:$0 sm:$0xff] }
  0x1e   :  { %v2622_v43 = vmul.f32 %v388_v63, %v85_v54  ;;  %v2625_v10 = vrot.slane %v865_v2, %v2407_v26  ;;  %v963_v45 = vrot.slane %v962_v4, 2  ;;  %v1145_v50 = vrot.slane %v2478_v55, %v2407_v26 }
  0x1f   :  { %v895_v53 = vcombine.high %v2608_v33, %v2608_v33  ;;  %vm982_vm4 = vcmp.eq.s32.totalorder %v2383_v3, %v2189_v36  ;;  %v1152_v58 = vrot.slane %v1138_v16, %v2407_v26  ;;  %v676_v11 = vrot.slane %v675_v19, 1  ;;  %v2192_v36 = vld [vmem:[%s3474_s1 + $0x5] ss:$0 sm:$0xff] }
  0x20   :  { %3541 = vst [vmem:[#allocation15_spill] sm:$0xff] %v2622_v43  ;;  %3542 = vst [vmem:[#allocation16_spill] sm:$0xff] %v2625_v10  ;;  %v896_v63 = vcombine.high %v2611_v35, %v2611_v35  ;;  %v897_v2 = vcombine.high %v2625_v10, %v2625_v10  ;;  %v2642_v24 = vrot.slane %v894_v37, %v2389_v5  ;;  %v2657_v22 = vsel %vm982_vm4, 1.0, %v3478_v28  ;;  %v2746_v43 = vld [vmem:[%s3476_s2 + $0x6] sm:$0x1] }
  0x21   :  { %v973_v47 = vadd.f32 %v972_v40, %v971_v41  ;;  %v2646_v57 = vrot.slane %v2589_v7, %v2389_v5  ;;  %v2649_v16 = vrot.slane %v1130_v31, %v2389_v5  ;;  %v964_v48 = vadd.f32 %v963_v45, %v962_v4  ;;  %3545 = vst [vmem:[#allocation19_spill] sm:$0xff] %v2657_v22  ;;  %v2662_v40 = vld [vmem:[%s3476_s2 + $0x5] sm:$0x1]  ;;  %v2185_v41 = vld [vmem:[%s3475_s0 + $0x18] sm:$0xff] }
  0x22   :  { %v1153_v37 = vcombine.high %v1145_v50, %v1145_v50  ;;  %3546 = vst [vmem:[#allocation20_spill] sm:$0xff] %v2662_v40  ;;  %v1154_v31 = vcombine.high %v1152_v58, %v1152_v58  ;;  %v2667_v54 = vrot.slane %v1145_v50, %v2407_v26  ;;  %v1427_v8 = vcombine.high %v2657_v22, %v2657_v22 }
  0x23   :  { %3543 = vst [vmem:[#allocation17_spill] sm:$0xff] %v2646_v57  ;;  %3544 = vst [vmem:[#allocation18_spill] sm:$0xff] %v2649_v16  ;;  %v677_v4 = vadd.f32 %v676_v11, %v675_v19  ;;  %v2672_v45 = vrot.slane %v896_v63, %v2389_v5  ;;  %v2675_v52 = vrot.slane %v895_v53, %v2389_v5  ;;  %v1419_v19 = vsub.f32 1.0, %v2662_v40 }
  0x24   :  { %3547 = vst [vmem:[#allocation21_spill] sm:$0xff] %v2667_v54  ;;  %vm1271_vm5 = vcmp.eq.s32.totalorder %v2383_v3, %v2192_v36  ;;  %v2682_v15 = vrot.slane %v1152_v58, %v2407_v26  ;;  %v1260_v50 = vmul.f32 %v2657_v22, %v2646_v57  ;;  %v1261_v11 = vmul.f32 %v2649_v16, %v973_v47 }
  0x25   :  { %3548 = vst [vmem:[#allocation22_spill] sm:$0xff] %v2675_v52  ;;  %v965_v63 = vrot.slane %v964_v48, 1  ;;  %v2689_v53 = vrot.slane %v897_v2, %v2389_v5  ;;  %v2692_v36 = vrot.slane %v1153_v37, %v2407_v26  ;;  %v1434_v28 = vrot.slane %v2657_v22, %v2407_v26  ;;  %3557 = vst [vmem:[#allocation30_spill] sm:$0xff] %v2746_v43 }
  0x26   :  { %v2697_v58 = vrot.slane %v1154_v31, %v2407_v26  ;;  %v1183_v57 = vcombine.high %v2667_v54, %v2667_v54  ;;  %v3551_v59 = vmov 0.0   ;;  %v1441_v16 = vrot.slane %v1427_v8, %v2407_v26 }
  0x27   :  { %3549 = vst [vmem:[#allocation23_spill] sm:$0xff] %v2689_v53  ;;  %v2702_v47 = vsel %vm1271_vm5, 1.0, %v3551_v59  ;;  %v2706_v2 = vmul.f32 %v677_v4, %v2430_v34  ;;  %v1184_v37 = vcombine.high %v2682_v15, %v2682_v15  ;;  %v1249_v31 = vmul.f32 %v2478_v55, %v2185_v41 }
  0x28   :  { %3550 = vst [vmem:[#allocation24_spill] sm:$0xff] %v2697_v58  ;;  %3552 = vst [vmem:[#allocation25_spill] sm:$0xff] %v2702_v47  ;;  %v1262_v42 = vadd.f32 %v1261_v11, %v1260_v50  ;;  %v2720_v8 = vrot.slane %v2662_v40, %v2389_v5  ;;  %v2723_v4 = vrot.slane %v1419_v19, %v2389_v5 }
  0x29   :  { %3553 = vst [vmem:[#allocation26_spill] sm:$0xff] %v2706_v2  ;;  %v966_v41 = vadd.f32 %v965_v63, %v964_v48  ;;  %v1185_v49 = vcombine.high %v2692_v36, %v2692_v36  ;;  %v1186_v7 = vcombine.high %v2697_v58, %v2697_v58  ;;  %v2735_v11 = vrot.slane %v1183_v57, %v2389_v5 }
  0x2a   :  { %3554 = vst [vmem:[#allocation27_spill] sm:$0xff] %v2720_v8  ;;  %3555 = vst [vmem:[#allocation28_spill] sm:$0xff] %v2723_v4  ;;  %v1442_v13 = vcombine.high %v1434_v28, %v1434_v28  ;;  %v1443_v40 = vcombine.high %v1441_v16, %v1441_v16  ;;  %v1250_v2 = vrot.slane %v1249_v31, 4  ;;  %v2740_v48 = vrot.slane %v1434_v28, %v2407_v26 }
  0x2b   :  { %v1538_v63 = vmul.f32 %v2657_v22, %v2188_v14  ;;  %vm1560_vm6 = vcmp.eq.s32.totalorder %v2383_v3, %v2195_v62  ;;  %v2750_v57 = vrot.slane %v1184_v37, %v2389_v5  ;;  %v1549_v19 = vmul.f32 %v2702_v47, %v2720_v8 }
  0x2c   :  { %3556 = vst [vmem:[#allocation29_spill] sm:$0xff] %v2740_v48  ;;  %v1550_v50 = vmul.f32 %v2723_v4, %v1262_v42  ;;  %v1708_v28 = vsub.f32 1.0, %v2746_v43  ;;  %v2757_v34 = vmul.f32 %v966_v41, %v2458_v46  ;;  %v2760_v14 = vrot.slane %v1185_v49, %v2389_v5 }
  0x2d   :  { %3558 = vst [vmem:[#allocation31_spill] sm:$0xff] %v2750_v57  ;;  %v2763_v22 = vrot.slane %v1186_v7, %v2389_v5  ;;  %v2766_v62 = vrot.slane %v1441_v16, %v2407_v26  ;;  %v2769_v37 = vrot.slane %v1442_v13, %v2407_v26  ;;  %v2772_v8 = vrot.slane %v1443_v40, %v2407_v26 }
  0x2e   :  { %3559 = vst [vmem:[#allocation32_spill] sm:$0xff] %v2757_v34  ;;  %3560 = vst [vmem:[#allocation33_spill] sm:$0xff] %v2760_v14  ;;  %v2775_v42 = vsel %vm1560_vm6, 1.0, %v3551_v59  ;;  %v1716_v41 = vcombine.high %v2702_v47, %v2702_v47  ;;  %v1251_v49 = vadd.f32 %v1250_v2, %v1249_v31  ;;  %v1472_v7 = vcombine.high %v2740_v48, %v2740_v48 }
  0x2f   :  { %3561 = vst [vmem:[#allocation34_spill] sm:$0xff] %v2763_v22  ;;  %3562 = vst [vmem:[#allocation35_spill] sm:$0xff] %v2772_v8  ;;  %v1539_v4 = vrot.slane %v1538_v63, 4  ;;  %v1723_v16 = vrot.slane %v2702_v47, %v2407_v26  ;;  %v1473_v13 = vcombine.high %v2766_v62, %v2766_v62  ;;  %v1551_v34 = vadd.f32 %v1550_v50, %v1549_v19  ;;  %v2812_v22 = vld [vmem:[%s3476_s2 + $0x7] sm:$0x1]  ;;  %v2191_v19 = vld [vmem:[%s3475_s0 + $0x28] sm:$0xff] }
  0x30   :  { %3563 = vst [vmem:[#allocation36_spill] sm:$0xff] %v2775_v42  ;;  %v2787_v40 = vrot.slane %v2746_v43, %v2389_v5  ;;  %v2790_v46 = vrot.slane %v1708_v28, %v2389_v5  ;;  %v1474_v2 = vcombine.high %v2769_v37, %v2769_v37  ;;  %v2005_v44 = vcombine.high %v2775_v42, %v2775_v42 }
  0x31   :  { %v1475_v50 = vcombine.high %v2772_v8, %v2772_v8  ;;  %v1730_v28 = vrot.slane %v1716_v41, %v2407_v26  ;;  %v2012_v43 = vrot.slane %v2775_v42, %v2407_v26  ;;  %v1252_v38 = vrot.slane %v1251_v49, 2  ;;  %3566 = vst [vmem:[#allocation39_spill] sm:$0xff] %v2812_v22 }
  0x32   :  { %3564 = vst [vmem:[#allocation37_spill] sm:$0xff] %v2787_v40  ;;  %3565 = vst [vmem:[#allocation38_spill] sm:$0xff] %v2790_v46  ;;  %v1540_v48 = vadd.f32 %v1539_v4, %v1538_v63  ;;  %v1731_v55 = vcombine.high %v1723_v16, %v1723_v16  ;;  %v2818_v41 = vrot.slane %v1472_v7, %v2389_v5  ;;  %v1997_v4 = vsub.f32 1.0, %v2812_v22  ;;  %v2198_v7 = vld [vmem:[%s3474_s1 + $0x7] ss:$0 sm:$0xff] }
  0x33   :  { %v1838_v57 = vmul.f32 %v2775_v42, %v2787_v40  ;;  %v1839_v58 = vmul.f32 %v2790_v46, %v1551_v34  ;;  %v2825_v63 = vrot.slane %v1474_v2, %v2389_v5  ;;  %v2828_v31 = vrot.slane %v1473_v13, %v2389_v5 }
  0x34   :  { %v2831_v8 = vrot.slane %v1723_v16, %v2407_v26  ;;  %v2019_v14 = vrot.slane %v2005_v44, %v2407_v26  ;;  %v2838_v40 = vrot.slane %v1475_v50, %v2389_v5  ;;  %v1732_v34 = vcombine.high %v1730_v28, %v1730_v28 }
  0x35   :  { %3567 = vst [vmem:[#allocation40_spill] sm:$0xff] %v2825_v63  ;;  %3568 = vst [vmem:[#allocation41_spill] sm:$0xff] %v2828_v31  ;;  %v2841_v46 = vrot.slane %v1730_v28, %v2407_v26  ;;  %v2020_v2 = vcombine.high %v2012_v43, %v2012_v43  ;;  %v1253_v63 = vadd.f32 %v1252_v38, %v1251_v49  ;;  %v1541_v13 = vrot.slane %v1540_v48, 2 }
  0x36   :  { %3569 = vst [vmem:[#allocation42_spill] sm:$0xff] %v2831_v8  ;;  %3570 = vst [vmem:[#allocation43_spill] sm:$0xff] %v2838_v40  ;;  %v2844_v31 = vrot.slane %v1731_v55, %v2407_v26  ;;  %v1827_v16 = vmul.f32 %v2702_v47, %v2191_v19  ;;  %v1840_v53 = vadd.f32 %v1839_v58, %v1838_v57 }
  0x37   :  { %vm1849_vm7 = vcmp.eq.s32.totalorder %v2383_v3, %v2198_v7  ;;  %v2850_v44 = vrot.slane %v2812_v22, %v2389_v5  ;;  %v2853_v50 = vrot.slane %v1997_v4, %v2389_v5  ;;  %v1761_v28 = vcombine.high %v2831_v8, %v2831_v8 }
  0x38   :  { %v1763_v38 = vcombine.high %v2844_v31, %v2844_v31  ;;  %v2021_v55 = vcombine.high %v2019_v14, %v2019_v14  ;;  %v2860_v49 = vrot.slane %v2012_v43, %v2407_v26  ;;  %v2863_v58 = vrot.slane %v1732_v34, %v2407_v26 }
  0x39   :  { %3571 = vst [vmem:[#allocation44_spill] sm:$0xff] %v2850_v44  ;;  %3572 = vst [vmem:[#allocation45_spill] sm:$0xff] %v2853_v50  ;;  %v1762_v3 = vcombine.high %v2841_v46, %v2841_v46  ;;  %v2870_v19 = vrot.slane %v2019_v14, %v2407_v26  ;;  %v1254_v4 = vrot.slane %v1253_v63, 1  ;;  %v1542_v7 = vadd.f32 %v1541_v13, %v1540_v48  ;;  %v2194_v14 = vld [vmem:[%s3475_s0 + $0x30] sm:$0xff] }
  0x3a   :  { %v1828_v22 = vrot.slane %v1827_v16, 4  ;;  %v2873_v47 = vsel %vm1849_vm7, 1.0, %v3551_v59  ;;  %v1772_v43 = vrot.slane %v2844_v31, %v2389_v5  ;;  %v2042_v34 = vrot.slane %v2020_v2, %v2407_v26 }
  0x3b   :  { %3573 = vst [vmem:[#allocation46_spill] sm:$0xff] %v2873_v47  ;;  %v2127_v40 = vmul.f32 %v2873_v47, %v2850_v44  ;;  %v2128_v52 = vmul.f32 %v2853_v50, %v1840_v53  ;;  %v1764_v48 = vcombine.high %v2863_v58, %v2863_v58  ;;  %v1776_v59 = vrot.slane %v1761_v28, %v2389_v5 }
  0x3c   :  { %v2888_v13 = vrot.slane %v1763_v38, %v2389_v5  ;;  %v2891_v31 = vrot.slane %v2021_v55, %v2407_v26  ;;  %v1784_v53 = vrot.slane %v2841_v46, %v2389_v5  ;;  %v2050_v57 = vcombine.high %v2860_v49, %v2860_v49 }
  0x3d   :  { %v2051_v50 = vcombine.high %v2870_v19, %v2870_v19  ;;  %v2052_v44 = vcombine.high %v2042_v34, %v2042_v34  ;;  %v1255_v47 = vadd.f32 %v1254_v4, %v1253_v63  ;;  %v1543_v28 = vrot.slane %v1542_v7, 1 }
  0x3e   :  { %3574 = vst [vmem:[#allocation47_spill] sm:$0xff] %v2888_v13  ;;  %3575 = vst [vmem:[#allocation48_spill] sm:$0xff] %v2891_v31  ;;  %v2901_v8 = vadd.f32 %v1828_v22, %v1827_v16  ;;  %v2053_v38 = vcombine.high %v2891_v31, %v2891_v31  ;;  %v2908_v13 = vrot.slane %v1762_v3, %v2389_v5  ;;  %v2197_v22 = vld [vmem:[%s3475_s0 + $0x38] sm:$0xff] }
  0x3f   :  { %v2911_v46 = vmul.f32 %v2775_v42, %v2194_v14  ;;  %v2913_v54 = vadd.f32 %v2128_v52, %v2127_v40  ;;  %v2916_v10 = vrot.slane %v1764_v48, %v2389_v5  ;;  %v2061_v16 = vrot.slane %v2042_v34, %v2389_v5 }
  0x40   :  { %3576 = vst [vmem:[#allocation49_spill] sm:$0xff] %v2901_v8  ;;  %v2073_v3 = vrot.slane %v2870_v19, %v2389_v5  ;;  %v2065_v52 = vrot.slane %v2050_v57, %v2389_v5  ;;  %v2930_v40 = vrot.slane %v2052_v44, %v2389_v5  ;;  %v2935_v48 = vrot.slane %v2051_v50, %v2389_v5 }
  0x41   :  { %3577 = vst [vmem:[#allocation50_spill] sm:$0xff] %v2911_v46  ;;  %3578 = vst [vmem:[#allocation51_spill] sm:$0xff] %v2913_v54  ;;  %v2938_v63 = vmul.f32 %v1255_v47, %v2524_v18  ;;  %v2940_v34 = vadd.f32 %v1543_v28, %v1542_v7  ;;  %v2944_v55 = vrot.slane %v2053_v38, %v2389_v5 }
  0x42   :  { %3580 = vst [vmem:[#allocation53_spill] sm:$0xff] %v2935_v48  ;;  %v3584_v44 = vrot.slane %v2481_v56, %v2389_v5  ;;  %v3585_v50 = vrot.slane %v2544_v30, %v2389_v5  ;;  %v2956_v7 = vmul.f32 %v2197_v22, %v2913_v54  ;;  %v3587_v38 = vrot.slane %v2611_v35, %v2389_v5 }
  0x43   :  { %3581 = vst [vmem:[#allocation54_spill] sm:$0xff] %v2938_v63  ;;  %3582 = vst [vmem:[#allocation55_spill] sm:$0xff] %v2940_v34  ;;  %v3588_v56 = vrot.slane %v2692_v36, %v2389_v5  ;;  %v3589_v30 = vrot.slane %v2769_v37, %v2389_v5 }
  0x44   :  { %3583 = vst [vmem:[#allocation56_spill] sm:$0xff] %v2944_v55  ;;  %3586 = vst [vmem:[#allocation57_spill] sm:$0xff] %v2956_v7 }
  0x7a   :  { %v2893_v2 = vpop.permute.xlu1 %38 }
  0x7b   :  { %v361_v57 = vmul.f32 %v3584_v44, %v2893_v2  ;;  %v650_v14 = vmul.f32 %v3585_v50, %v2893_v2  ;;  %v2962_v19 = vmul.f32 %v3587_v38, %v2893_v2  ;;  %v2968_v44 = vmul.f32 %v3588_v56, %v2893_v2 }
  0x7c   :  { %v2974_v50 = vmul.f32 %v3589_v30, %v2893_v2  ;;  %v2977_v22 = vmul.f32 %v1772_v43, %v2893_v2  ;;  %v2988_v56 = vmul.f32 %v2061_v16, %v2893_v2 }
  0x7e   :  { %v2926_v4 = vpop.permute.xlu1 %45  ;;  %3591 = vst [vmem:[#allocation59_spill] sm:$0xff] %v2988_v56 }
  0x7f   :  { %3579 = vst [vmem:[#allocation52_spill] sm:$0xff] %v2926_v4  ;;  %v362_v38 = vmul.f32 %v2528_v20, %v2926_v4  ;;  %v2992_v37 = vmul.f32 %v2584_v1, %v2926_v4  ;;  %v2996_v43 = vmul.f32 %v2642_v24, %v2926_v4  ;;  %v3034_v34 = vmul.f32 %v2065_v52, %v2926_v4 }
  0x80   :  { %v3598_v52 = vrot.slane %v2766_v62, %v2389_v5 }
  0x81   :  { %v97_v28 = vpop.permute.xlu0 %96  ;;  %3595 = vst [vmem:[#allocation60_spill] sm:$0xff] %v3034_v34 }
  0x82   :  { %v2980_v47 = vadd.f32 %v97_v28, %v2412_v27  ;;  %v100_v35 = vmul.f32 %v2415_v29, %v97_v28  ;;  %v2985_v36 = vpop.permute.xlu1 %59  ;;  %v3000_v27 = vmul.f32 %v2735_v11, %v2926_v4  ;;  %v3004_v29 = vmul.f32 %v2818_v41, %v2926_v4 }
  0x83   :  { %v3011_v28 = vmul.f32 %v1776_v59, %v2926_v4  ;;  %v3592_v11 = vrot.slane %v2489_v60, %v2389_v5  ;;  %v3593_v41 = vrot.slane %v2536_v23, %v2389_v5  ;;  %v3596_v23 = vrot.slane %v2468_v51, %v2389_v5 }
  0x84   :  { %3590 = vst [vmem:[#allocation58_spill] sm:$0xff] %v2980_v47  ;;  %v101_v20 = vrot.slane %v100_v35, 4  ;;  %v119_v16 = vcombine.high %v2980_v47, %v2980_v47  ;;  %v126_v1 = vrot.slane %v2980_v47, %v2407_v26  ;;  %v3594_v47 = vrot.slane %v2608_v33, %v2389_v5 }
  0x85   :  { %v3013_v24 = vpop.permute.xlu0 %31  ;;  %v3019_v30 = vmul.f32 %v3592_v11, %v2985_v36  ;;  %v3025_v63 = vmul.f32 %v3593_v41, %v2985_v36  ;;  %v3597_v33 = vrot.slane %v2682_v15, %v2389_v5 }
  0x86   :  { %v3031_v59 = vmul.f32 %v3594_v47, %v2985_v36  ;;  %v102_v7 = vadd.f32 %v101_v20, %v100_v35  ;;  %v133_v60 = vrot.slane %v119_v16, %v2407_v26  ;;  %v134_v11 = vcombine.high %v126_v1, %v126_v1  ;;  %v3059_v55 = vpop.permute.xlu1 %73 }
  0x87   :  { %v142_v46 = vrot.slane %v126_v1, %v2407_v26  ;;  %v360_v41 = vmul.f32 %v3596_v23, %v3013_v24  ;;  %v3046_v47 = vmul.f32 %v3597_v33, %v2985_v36  ;;  %v3052_v35 = vmul.f32 %v3598_v52, %v2985_v36 }
  0x88   :  { %v3055_v20 = vmul.f32 %v1784_v53, %v2985_v36  ;;  %v103_v16 = vrot.slane %v102_v7, 2  ;;  %v135_v1 = vcombine.high %v133_v60, %v133_v60  ;;  %v149_v51 = vrot.slane %v133_v60, %v2407_v26 }
  0x89   :  { %v156_v23 = vrot.slane %v134_v11, %v2407_v26  ;;  %v164_v15 = vcombine.high %v142_v46, %v142_v46  ;;  %v3599_v33 = vrot.slane %v2503_v6, %v2389_v5  ;;  %v3065_v62 = vpop.permute.xlu0 %52  ;;  %v366_v53 = vmul.f32 %v2541_v25, %v3059_v55 }
  0x8a   :  { %v3070_v52 = vmul.f32 %v2073_v3, %v2985_v36  ;;  %v104_v42 = vadd.f32 %v103_v16, %v102_v7  ;;  %v163_v60 = vrot.slane %v135_v1, %v2407_v26  ;;  %v165_v11 = vcombine.high %v149_v51, %v149_v51 }
  0x8b   :  { %v649_v8 = vmul.f32 %v3599_v33, %v3013_v24  ;;  %v166_v54 = vcombine.high %v156_v23, %v156_v23  ;;  %v171_v18 = vrot.slane %v142_v46, %v2389_v5  ;;  %v175_v48 = vrot.slane %v156_v23, %v2389_v5 }
  0x8c   :  { %v179_v6 = vrot.slane %v164_v15, %v2389_v5  ;;  %v187_v33 = vrot.slane %v149_v51, %v2389_v5  ;;  %v105_v34 = vrot.slane %v104_v42, 1  ;;  %v167_v31 = vcombine.high %v163_v60, %v163_v60 }
  0x8d   :  { %v191_v25 = vrot.slane %v163_v60, %v2389_v5  ;;  %v368_v56 = vadd.f32 %v361_v57, %v360_v41  ;;  %v183_v3 = vrot.slane %v166_v54, %v2389_v5  ;;  %v195_v7 = vrot.slane %v165_v11, %v2389_v5  ;;  %v3083_v1 = vpop.permute.xlu0 %66 }
  0x8e   :  { %v3081_v16 = vadd.f32 %v187_v33, %v2985_v36  ;;  %v657_v46 = vadd.f32 %v650_v14, %v649_v8  ;;  %v209_v23 = vadd.f32 %v175_v48, %v2893_v2  ;;  %v363_v51 = vmul.f32 %v2531_v21, %v3065_v62 }
  0x8f   :  { %v3089_v15 = vadd.f32 %v191_v25, %v3083_v1  ;;  %v655_v57 = vmul.f32 %v2600_v12, %v3059_v55  ;;  %v3093_v54 = vadd.f32 %v105_v34, %v104_v42  ;;  %v210_v41 = vadd.f32 %v179_v6, %v2926_v4 }
  0x90   :  { %v208_v60 = vadd.f32 %v171_v18, %v3013_v24  ;;  %v3098_v11 = vadd.f32 %v195_v7, %v3059_v55  ;;  %v199_v8 = vrot.slane %v167_v31, %v2389_v5  ;;  %v369_v21 = vadd.f32 %v368_v56, %v362_v38 }
  0x91   :  { %v217_v14 = vmax.f32 %v209_v23, %v3089_v15  ;;  %v652_v48 = vmul.f32 %v2595_v9, %v3065_v62  ;;  %v3105_v12 = vpop.permute.xlu0 %80  ;;  %v211_v42 = vadd.f32 %v183_v3, %v3065_v62  ;;  %v658_v34 = vadd.f32 %v657_v46, %v2992_v37 }
  0x92   :  { %v216_v33 = vmax.f32 %v208_v60, %v3081_v16  ;;  %v3600_v18 = vrot.slane %v2577_v61, %v2389_v5  ;;  %v215_v31 = vadd.f32 %v199_v8, %v3105_v12  ;;  %v3601_v38 = vrot.slane %v2493_v0, %v2389_v5 }
  0x93   :  { %v370_v56 = vadd.f32 %v369_v21, %v363_v51  ;;  %v3602_v25 = vrot.slane %v2554_v39, %v2389_v5  ;;  %v218_v37 = vmax.f32 %v210_v41, %v3098_v11  ;;  %v659_v46 = vadd.f32 %v658_v34, %v652_v48 }
  0x94   :  { %v938_v6 = vmul.f32 %v3600_v18, %v3013_v24  ;;  %v365_v9 = vmul.f32 %v3601_v38, %v3083_v1  ;;  %v220_v7 = vmax.f32 %v216_v33, %v217_v14  ;;  %v941_v61 = vmul.f32 %v2672_v45, %v3065_v62  ;;  %v3603_v38 = vld [vmem:[#allocation16_spill] sm:$0xff]  ;;  %v3605_v45 = vld [vmem:[#allocation21_spill] sm:$0xff] }
  0x95   :  { %v654_v3 = vmul.f32 %v3602_v25, %v3083_v1  ;;  %v219_v18 = vmax.f32 %v211_v42, %v215_v31  ;;  %v367_v8 = vmul.f32 %v2547_v32, %v3105_v12  ;;  %v371_v0 = vadd.f32 %v370_v56, %v3019_v30  ;;  %v3607_v30 = vld [vmem:[#allocation22_spill] sm:$0xff] }
  0x96   :  { %v946_v51 = vadd.f32 %v2962_v19, %v938_v6  ;;  %v656_v21 = vmul.f32 %v2605_v17, %v3105_v12  ;;  %v660_v39 = vadd.f32 %v659_v46, %v3025_v63  ;;  %v3604_v14 = vrot.slane %v3603_v38, %v2389_v5  ;;  %v3608_v63 = vld [vmem:[#allocation23_spill] sm:$0xff]  ;;  %v3609_v46 = vld [vmem:[#allocation33_spill] sm:$0xff] }
  0x97   :  { %v3606_v33 = vrot.slane %v3605_v45, %v2389_v5  ;;  %v221_v32 = vmax.f32 %v218_v37, %v219_v18  ;;  %v372_v25 = vadd.f32 %v371_v0, %v365_v9  ;;  %v944_v19 = vmul.f32 %v3607_v30, %v3059_v55  ;;  %v3610_v37 = vld [vmem:[#allocation24_spill] sm:$0xff]  ;;  %v3612_v0 = vld [vmem:[#allocation31_spill] sm:$0xff]  ;;  %v3614_v30 = vld [vmem:[#allocation29_spill] sm:$0xff] }
  0x98   :  { %v943_v48 = vmul.f32 %v3604_v14, %v3083_v1  ;;  %v947_v6 = vadd.f32 %v946_v51, %v2996_v43  ;;  %v661_v17 = vadd.f32 %v660_v39, %v654_v3  ;;  %v945_v56 = vmul.f32 %v3608_v63, %v3105_v12  ;;  %v3613_v39 = vld [vmem:[#allocation34_spill] sm:$0xff] }
  0x99   :  { %v1227_v34 = vmul.f32 %v3606_v33, %v3013_v24  ;;  %v1230_v38 = vmul.f32 %v3609_v46, %v3065_v62  ;;  %v3148_v4 = vmax.f32 %v220_v7, %v221_v32  ;;  %v373_v45 = vadd.f32 %v372_v25, %v366_v53 }
  0x9a   :  { %v3611_v9 = vrot.slane %v3610_v37, %v2389_v5  ;;  %v1233_v43 = vmul.f32 %v3612_v0, %v3059_v55  ;;  %v662_v3 = vadd.f32 %v661_v17, %v655_v57  ;;  %v948_v51 = vadd.f32 %v947_v6, %v941_v61  ;;  %v3616_v61 = vld [vmem:[#allocation40_spill] sm:$0xff]  ;;  %v3617_v17 = vld [vmem:[#allocation35_spill] sm:$0xff] }
  0x9b   :  { %v1235_v14 = vadd.f32 %v2968_v44, %v1227_v34  ;;  %v1234_v33 = vmul.f32 %v3613_v39, %v3105_v12  ;;  %v3615_v44 = vrot.slane %v3614_v30, %v2389_v5  ;;  %v226_v53 = vsub.f32 %v211_v42, %v3148_v4 }
  0x9c   :  { %v1232_v18 = vmul.f32 %v3611_v9, %v3083_v1  ;;  %v230_v34 = vsub.f32 %v215_v31, %v3148_v4  ;;  %v223_v32 = vsub.f32 %v208_v60, %v3148_v4  ;;  %v224_v25 = vsub.f32 %v209_v23, %v3148_v4 }
  0x9d   :  { %v1516_v7 = vmul.f32 %v3615_v44, %v3013_v24  ;;  %v225_v63 = vsub.f32 %v210_v41, %v3148_v4  ;;  %v1236_v57 = vadd.f32 %v1235_v14, %v3000_v27  ;;  %v1519_v6 = vmul.f32 %v3616_v61, %v3065_v62  ;;  %v3619_v27 = vld [vmem:[#allocation41_spill] sm:$0xff]  ;;  %v3620_v61 = vld [vmem:[#allocation3_spill] sm:$0xff] }
  0x9e   :  { %v3618_v46 = vrot.slane %v3617_v17, %v2389_v5  ;;  %v237_v9 = vmul.f32 1.442695, %v226_v53  ;;  %v227_v42 = vsub.f32 %v3081_v16, %v3148_v4  ;;  %v231_v31 = vmul.f32 1.442695, %v223_v32  ;;  %v3621_v17 = vld [vmem:[#allocation5_spill] sm:$0xff] }
  0x9f   :  { %v374_v60 = vadd.f32 %v373_v45, %v367_v8  ;;  %v228_v23 = vsub.f32 %v3089_v15, %v3148_v4  ;;  %v233_v41 = vmul.f32 1.442695, %v224_v25  ;;  %v663_v0 = vadd.f32 %v662_v3, %v656_v21 }
  0xa0   :  { %v1521_v37 = vmul.f32 %v3618_v46, %v3083_v1  ;;  %v1522_v14 = vmul.f32 %v3619_v27, %v3059_v55  ;;  %v245_v39 = vmul.f32 1.442695, %v230_v34  ;;  %v229_v30 = vsub.f32 %v3098_v11, %v3148_v4 }
  0xa1   :  { %v235_v44 = vmul.f32 1.442695, %v225_v63  ;;  %v375_v53 = vmul.f32 %v3620_v61, %v374_v60  ;;  %2205 = vpow2.f32 %v237_v9  ;;  %v664_v16 = vmul.f32 %v3621_v17, %v663_v0 }
  0xa2   :  { %v949_v8 = vadd.f32 %v948_v51, %v3031_v59  ;;  %v1237_v45 = vadd.f32 %v1236_v57, %v1230_v38  ;;  %2207 = vpow2.f32 %v231_v31  ;;  %v239_v15 = vmul.f32 1.442695, %v227_v42  ;;  %v3622_v57 = vld [vmem:[#allocation42_spill] sm:$0xff] }
  0xa3   :  { %v376_v32 = vrot.slane %v375_v53, 4  ;;  %v1524_v21 = vadd.f32 %v2974_v50, %v1516_v7  ;;  %2209 = vpow2.f32 %v233_v41  ;;  %v665_v3 = vrot.slane %v664_v16, 4  ;;  %v3625_v41 = vld [vmem:[#allocation8_spill] sm:$0xff] }
  0xa4   :  { %v950_v34 = vadd.f32 %v949_v8, %v943_v48  ;;  %v1238_v25 = vadd.f32 %v1237_v45, %v3046_v47  ;;  %v241_v11 = vmul.f32 1.442695, %v228_v23  ;;  %v243_v63 = vmul.f32 1.442695, %v229_v30 }
  0xa5   :  { %v377_v46 = vadd.f32 %v376_v32, %v375_v53  ;;  %v1525_v9 = vadd.f32 %v1524_v21, %v3004_v29  ;;  %2211 = vpow2.f32 %v235_v44  ;;  %v666_v60 = vadd.f32 %v665_v3, %v664_v16  ;;  %v3624_v29 = vld [vmem:[#allocation43_spill] sm:$0xff] }
  0xa6   :  { %v951_v0 = vadd.f32 %v950_v34, %v944_v19  ;;  %v1239_v59 = vadd.f32 %v1238_v25, %v1232_v18  ;;  %2213 = vpow2.f32 %v245_v39  ;;  %v3623_v50 = vrot.slane %v3622_v57, %v2389_v5  ;;  %v3626_v39 = vld [vmem:[#allocation47_spill] sm:$0xff] }
  0xa7   :  { %v378_v38 = vrot.slane %v377_v46, 2  ;;  %v1526_v51 = vadd.f32 %v1525_v9, %v1519_v6  ;;  %2215 = vpow2.f32 %v239_v15  ;;  %v667_v48 = vrot.slane %v666_v60, 2  ;;  %v3627_v16 = vld [vmem:[#allocation19_spill] sm:$0xff] }
  0xa8   :  { %v1805_v7 = vmul.f32 %v3623_v50, %v3013_v24  ;;  %v952_v47 = vadd.f32 %v951_v0, %v945_v56  ;;  %v1240_v42 = vadd.f32 %v1239_v59, %v1233_v43  ;;  %2217 = vpow2.f32 %v241_v11 }
  0xa9   :  { %v379_v31 = vadd.f32 %v378_v38, %v377_v46  ;;  %v1523_v23 = vmul.f32 %v3624_v29, %v3105_v12  ;;  %v1527_v19 = vadd.f32 %v1526_v51, %v3052_v35  ;;  %v668_v18 = vadd.f32 %v667_v48, %v666_v60 }
  0xaa   :  { %v953_v27 = vmul.f32 %v3625_v41, %v952_v47  ;;  %v1241_v6 = vadd.f32 %v1240_v42, %v1234_v33  ;;  %v1808_v30 = vmul.f32 %v3626_v39, %v3065_v62  ;;  %2219 = vpow2.f32 %v243_v63  ;;  %v3632_v42 = vld [vmem:[#allocation6_spill] sm:$0xff] }
  0xab   :  { %v380_v44 = vrot.slane %v379_v31, 1  ;;  %v1528_v61 = vadd.f32 %v1527_v19, %v1521_v37  ;;  %v1813_v56 = vadd.f32 %v2977_v22, %v1805_v7  ;;  %v2206_v43 = vpop.eup %2205  ;;  %v669_v53 = vrot.slane %v668_v18, 1  ;;  %v3633_v19 = vld [vmem:[#allocation59_spill] sm:$0xff] }
  0xac   :  { %v954_v17 = vrot.slane %v953_v27, 4  ;;  %v1242_v8 = vmul.f32 %v3627_v16, %v1241_v6  ;;  %v3628_v35 = vrot.slane %v2863_v58, %v2389_v5  ;;  %v2208_v15 = vpop.eup %2207  ;;  %v1811_v21 = vmul.f32 %v2908_v13, %v3059_v55  ;;  %v3630_v58 = vld [vmem:[#allocation2_spill] sm:$0xff]  ;;  %v3227_v16 = vpop.permute.xlu1 %2132 }
  0xad   :  { %v381_v33 = vadd.f32 %v380_v44, %v379_v31  ;;  %v1529_v32 = vadd.f32 %v1528_v61, %v1522_v14  ;;  %v1814_v37 = vadd.f32 %v1813_v56, %v3011_v28  ;;  %v2210_v3 = vpop.eup %2209  ;;  %v670_v22 = vadd.f32 %v669_v53, %v668_v18  ;;  %v3637_v56 = vld [vmem:[#allocation60_spill] sm:$0xff] }
  0xae   :  { %v1810_v45 = vmul.f32 %v3628_v35, %v3083_v1  ;;  %v955_v34 = vadd.f32 %v954_v17, %v953_v27  ;;  %v1243_v25 = vrot.slane %v1242_v8, 4  ;;  %v3629_v11 = vrot.slane %v2860_v49, %v2389_v5  ;;  %v3631_v49 = vld [vmem:[#allocation25_spill] sm:$0xff]  ;;  %v3634_v27 = vld [vmem:[#allocation15_spill] sm:$0xff] }
  0xaf   :  { %v247_v46 = vadd.f32 %v2210_v3, %v2208_v15  ;;  %v389_v9 = vmul.f32 %v381_v33, %v3630_v58  ;;  %v1530_v60 = vadd.f32 %v1529_v32, %v1523_v23  ;;  %v1815_v0 = vadd.f32 %v1814_v37, %v1808_v30  ;;  %v2212_v14 = vpop.eup %2211 }
  0xb0   :  { %v2094_v63 = vmul.f32 %v3629_v11, %v3013_v24  ;;  %v956_v59 = vrot.slane %v955_v34, 2  ;;  %v1244_v38 = vadd.f32 %v1243_v25, %v1242_v8  ;;  %v1812_v13 = vmul.f32 %v2916_v10, %v3105_v12  ;;  %v2214_v51 = vpop.eup %2213 }
  0xb1   :  { %v2097_v28 = vmul.f32 %v2930_v40, %v3065_v62  ;;  %v248_v57 = vadd.f32 %v2212_v14, %v247_v46  ;;  %v390_v50 = vadd.f32 %v389_v9, %v3093_v54  ;;  %v1531_v7 = vmul.f32 %v3631_v49, %v1530_v60  ;;  %v2216_v47 = vpop.eup %2215  ;;  %v3635_v54 = vld [vmem:[#allocation48_spill] sm:$0xff]  ;;  %v3640_v46 = vld [vmem:[#allocation11_spill] sm:$0xff] }
  0xb2   :  { %v1816_v48 = vadd.f32 %v1815_v0, %v3055_v20  ;;  %v678_v31 = vmul.f32 %v670_v22, %v3632_v42  ;;  %v957_v29 = vadd.f32 %v956_v59, %v955_v34  ;;  %v1245_v23 = vrot.slane %v1244_v38, 2  ;;  %v2218_v41 = vpop.eup %2217  ;;  %v3639_v34 = vld [vmem:[#allocation26_spill] sm:$0xff]  ;;  %v3641_v0 = vld [vmem:[#allocation51_spill] sm:$0xff] }
  0xb3   :  { %v2102_v18 = vadd.f32 %v3633_v19, %v2094_v63  ;;  %v249_v10 = vadd.f32 %v2206_v43, %v248_v57  ;;  %v392_v6 = vadd.f32 %v3634_v27, %v390_v50  ;;  %v1532_v40 = vrot.slane %v1531_v7, 4  ;;  %v3643_v50 = vld [vmem:[#allocation49_spill] sm:$0xff]  ;;  %v3646_v42 = vld [vmem:[#allocation50_spill] sm:$0xff] }
  0xb4   :  { %v1817_v39 = vadd.f32 %v1816_v48, %v1810_v45  ;;  %v958_v30 = vrot.slane %v957_v29, 1  ;;  %v1246_v44 = vadd.f32 %v1245_v23, %v1244_v38  ;;  %v3636_v61 = vrot.slane %v3635_v54, %v2389_v5  ;;  %v2220_v17 = vpop.eup %2219  ;;  %v3638_v45 = vld [vmem:[#allocation53_spill] sm:$0xff]  ;;  %v3642_v38 = vld [vmem:[#allocation36_spill] sm:$0xff] }
  0xb5   :  { %v2103_v53 = vadd.f32 %v2102_v18, %v3637_v56  ;;  %v250_v8 = vadd.f32 %v2216_v47, %v249_v10  ;;  %v679_v35 = vadd.f32 %v678_v31, %v392_v6  ;;  %v1533_v15 = vadd.f32 %v1532_v40, %v1531_v7  ;;  %v3645_v48 = vld [vmem:[#allocation56_spill] sm:$0xff]  ;;  %v3648_v18 = vld [vmem:[#allocation57_spill] sm:$0xff]  ;;  %v3650_v6 = vld [vmem:[#allocation14_spill] sm:$0xff] }
  0xb6   :  { %v2099_v20 = vmul.f32 %v3636_v61, %v3083_v1  ;;  %v1818_v43 = vadd.f32 %v1817_v39, %v1811_v21  ;;  %v959_v33 = vadd.f32 %v958_v30, %v957_v29  ;;  %v1247_v32 = vrot.slane %v1246_v44, 1  ;;  %v3649_v10 = vld [vmem:[#allocation32_spill] sm:$0xff] }
  0xb7   :  { %v2100_v37 = vmul.f32 %v3638_v45, %v3059_v55  ;;  %v2104_v3 = vadd.f32 %v2103_v53, %v2097_v28  ;;  %v251_v22 = vadd.f32 %v2218_v41, %v250_v8  ;;  %v681_v25 = vadd.f32 %v3639_v34, %v679_v35  ;;  %v3651_v53 = vld [vmem:[#allocation55_spill] sm:$0xff]  ;;  %v3654_v45 = vld [vmem:[#allocation46_spill] sm:$0xff] }
  0xb8   :  { %v1534_v11 = vrot.slane %v1533_v15, 2  ;;  %v1819_v63 = vadd.f32 %v1818_v43, %v1812_v13  ;;  %v967_v58 = vmul.f32 %v959_v33, %v3640_v46  ;;  %v1248_v9 = vadd.f32 %v1247_v32, %v1246_v44  ;;  %v3653_v33 = vld [vmem:[#allocation20_spill] sm:$0xff] }
  0xb9   :  { %v2105_v60 = vadd.f32 %v2104_v3, %v3070_v52  ;;  %v2154_v14 = vmul.f32 %v3227_v16, %v3641_v0  ;;  %v252_v21 = vadd.f32 %v2220_v17, %v251_v22  ;;  %v3644_v28 = vrot.slane %v3643_v50, 2 }
  0xba   :  { %v1535_v59 = vadd.f32 %v1534_v11, %v1533_v15  ;;  %v1820_v57 = vmul.f32 %v3642_v38, %v1819_v63  ;;  %v968_v7 = vadd.f32 %v967_v58, %v681_v25  ;;  %v2101_v13 = vmul.f32 %v3645_v48, %v3105_v12  ;;  %v3652_v15 = vld [vmem:[#allocation54_spill] sm:$0xff] }
  0xbb   :  { %v1831_v49 = vadd.f32 %v3644_v28, %v3643_v50  ;;  %v2106_v47 = vadd.f32 %v2105_v60, %v2099_v20  ;;  %v3647_v31 = vrot.slane %v3646_v42, 4  ;;  %v253_v29 = vadd.f32 %v2214_v51, %v252_v21  ;;  %v3655_v50 = vld [vmem:[#allocation30_spill] sm:$0xff] }
  0xbc   :  { %v1536_v23 = vrot.slane %v1535_v59, 1  ;;  %v1821_v19 = vrot.slane %v1820_v57, 4  ;;  %v2162_v41 = vrot.slane %v3648_v18, 4  ;;  %v970_v27 = vadd.f32 %v3649_v10, %v968_v7 }
  0xbd   :  { %v2118_v52 = vadd.f32 %v3647_v31, %v3646_v42  ;;  %v1256_v40 = vmul.f32 %v1248_v9, %v3650_v6  ;;  %v2107_v39 = vadd.f32 %v2106_v47, %v2100_v37  ;;  %v2155_v30 = vrot.slane %v2154_v14, 4 }
  0xbe   :  { %2221 = vlog2.f32 %v253_v29  ;;  %v1537_v44 = vadd.f32 %v1536_v23, %v1535_v59  ;;  %v1822_v54 = vadd.f32 %v1821_v19, %v1820_v57  ;;  %v1547_v17 = vmul.f32 %v3651_v53, %v3650_v6  ;;  %v2335_v19 = vld [vmem:[%s3475_s0 + $0x8] sm:$0xff] }
  0xbf   :  { %v1257_v61 = vadd.f32 %v1256_v40, %v970_v27  ;;  %v2108_v20 = vadd.f32 %v2107_v39, %v2101_v13  ;;  %v2119_v56 = vrot.slane %v2118_v52, 2  ;;  %v1832_v8 = vrot.slane %v1831_v49, 1  ;;  %v3656_v27 = vld [vmem:[#allocation58_spill] sm:$0xff]  ;;  %v3657_v6 = vld [vmem:[#allocation7_spill] sm:$0xff]  ;;  %v3658_v39 = vld [vmem:[#allocation4_spill] sm:$0xff] }
  0xc0   :  { %v1823_v51 = vrot.slane %v1822_v54, 2  ;;  %v2163_v35 = vadd.f32 %v2162_v41, %v3648_v18  ;;  %v1545_v32 = vmul.f32 %v1537_v44, %v3653_v33  ;;  %v2156_v3 = vadd.f32 %v2155_v30, %v2154_v14  ;;  %v3659_v44 = vld [vmem:[#allocation39_spill] sm:$0xff] }
  0xc1   :  { %v1259_v43 = vadd.f32 %v3652_v15, %v1257_v61  ;;  %v2109_v37 = vmul.f32 %v3654_v45, %v2108_v20  ;;  %v2120_v11 = vadd.f32 %v2119_v56, %v2118_v52  ;;  %v1833_v46 = vadd.f32 %v1832_v8, %v1831_v49 }
  0xc2   :  { %v1824_v22 = vadd.f32 %v1823_v51, %v1822_v54  ;;  %v2164_v58 = vrot.slane %v2163_v35, 2  ;;  %v2157_v0 = vrot.slane %v2156_v3, 2  ;;  %v268_v40 = vmul.f32 %v3657_v6, %v3656_v27 }
  0xc3   :  { %v1546_v34 = vadd.f32 %v1545_v32, %v1259_v43  ;;  %v2110_v25 = vrot.slane %v2109_v37, 4  ;;  %v2121_v38 = vrot.slane %v2120_v11, 1  ;;  %v1836_v7 = vmul.f32 %v1833_v46, %v3653_v33 }
  0xc4   :  { %v1825_v63 = vrot.slane %v1824_v22, 1  ;;  %v2165_v48 = vadd.f32 %v2164_v58, %v2163_v35  ;;  %v2158_v47 = vadd.f32 %v2157_v0, %v2156_v3 }
  0xc5   :  { %v1548_v9 = vadd.f32 %v1547_v17, %v1546_v34  ;;  %v2111_v60 = vadd.f32 %v2110_v25, %v2109_v37  ;;  %v2122_v52 = vadd.f32 %v2121_v38, %v2120_v11 }
  0xc6   :  { %v1826_v21 = vadd.f32 %v1825_v63, %v1824_v22  ;;  %v2166_v23 = vrot.slane %v2165_v48, 1  ;;  %v2159_v10 = vrot.slane %v2158_v47, 1 }
  0xc7   :  { %v2112_v59 = vrot.slane %v2111_v60, 2 }
  0xc8   :  { %v2222_v57 = vpop.eup %2221  ;;  %v1834_v28 = vmul.f32 %v1826_v21, %v3655_v50  ;;  %v2167_v61 = vadd.f32 %v2166_v23, %v2165_v48  ;;  %v2160_v53 = vadd.f32 %v2159_v10, %v2158_v47 }
  0xc9   :  { %v255_v14 = vmul.f32 0.6931472, %v2222_v57  ;;  %v2113_v13 = vadd.f32 %v2112_v59, %v2111_v60 }
  0xca   :  { %v1835_v42 = vadd.f32 %v1834_v28, %v1548_v9  ;;  %v2169_v35 = vmul.f32 %v2167_v61, %v3659_v44 }
  0xcb   :  { %v256_v31 = vadd.f32 %v255_v14, %v3148_v4  ;;  %v2114_v49 = vrot.slane %v2113_v13, 1  ;;  %v2125_v4 = vmul.f32 %v2122_v52, %v3655_v50 }
  0xcc   :  { %v1837_v29 = vadd.f32 %v1836_v7, %v1835_v42 }
  0xcd   :  { %v257_v18 = vadd.f32 %v2335_v19, %v256_v31  ;;  %v2115_v41 = vadd.f32 %v2114_v49, %v2113_v13  ;;  %v3660_v13 = vld [vmem:[#allocation52_spill] sm:$0xff] }
  0xcf   :  { %v262_v30 = vmul.f32 %v3658_v39, %v257_v18  ;;  %v2123_v54 = vmul.f32 %v2115_v41, %v3659_v44 }
  0xd1   :  { %v3265_v20 = vadd.f32 %v268_v40, %v262_v30  ;;  %v2124_v56 = vadd.f32 %v2123_v54, %v1837_v29 }
  0xd3   :  { %v408_v17 = vcombine.high %v3265_v20, %v3265_v20  ;;  %v415_v51 = vrot.slane %v3265_v20, %v2407_v26  ;;  %v2126_v8 = vadd.f32 %v2125_v4, %v2124_v56 }
  0xd5   :  { %v422_v15 = vrot.slane %v408_v17, %v2407_v26  ;;  %v423_v43 = vcombine.high %v415_v51, %v415_v51  ;;  %v431_v33 = vrot.slane %v415_v51, %v2407_v26  ;;  %v2168_v32 = vadd.f32 %v2160_v53, %v2126_v8 }
  0xd7   :  { %v424_v45 = vcombine.high %v422_v15, %v422_v15  ;;  %v438_v37 = vrot.slane %v422_v15, %v2407_v26  ;;  %v445_v3 = vrot.slane %v423_v43, %v2407_v26  ;;  %v453_v22 = vcombine.high %v431_v33, %v431_v33 }
  0xd8   :  { %v3276_v34 = vadd.f32 %v2169_v35, %v2168_v32  ;;  %v460_v58 = vrot.slane %v431_v33, %v2389_v5 }
  0xd9   :  { %v452_v25 = vrot.slane %v424_v45, %v2407_v26  ;;  %v454_v11 = vcombine.high %v438_v37, %v438_v37  ;;  %v455_v63 = vcombine.high %v445_v3, %v445_v3  ;;  %v464_v46 = vrot.slane %v445_v3, %v2389_v5 }
  0xda   :  { %v468_v9 = vrot.slane %v453_v22, %v2389_v5  ;;  %v476_v60 = vrot.slane %v438_v37, %v2389_v5  ;;  %v497_v14 = vadd.f32 %v460_v58, %v3013_v24 }
  0xdb   :  { %v456_v0 = vcombine.high %v452_v25, %v452_v25  ;;  %v472_v21 = vrot.slane %v455_v63, %v2389_v5  ;;  %v480_v59 = vrot.slane %v452_v25, %v2389_v5  ;;  %v484_v38 = vrot.slane %v454_v11, %v2389_v5 }
  0xdc   :  { %v498_v57 = vadd.f32 %v464_v46, %v2893_v2  ;;  %v501_v28 = vadd.f32 %v476_v60, %v2985_v36  ;;  %v499_v47 = vadd.f32 %v468_v9, %v3660_v13 }
  0xdd   :  { %v488_v50 = vrot.slane %v456_v0, %v2389_v5  ;;  %v502_v7 = vadd.f32 %v480_v59, %v3083_v1  ;;  %v503_v48 = vadd.f32 %v484_v38, %v3059_v55  ;;  %v500_v42 = vadd.f32 %v472_v21, %v3065_v62  ;;  %v2336_v38 = vld [vmem:[%s3475_s0 + $0x10] sm:$0xff] }
  0xde   :  { %v505_v52 = vmax.f32 %v497_v14, %v501_v28 }
  0xdf   :  { %v504_v31 = vadd.f32 %v488_v50, %v3105_v12  ;;  %v506_v49 = vmax.f32 %v498_v57, %v502_v7  ;;  %v507_v29 = vmax.f32 %v499_v47, %v503_v48  ;;  %v3661_v50 = vld [vmem:[#allocation9_spill] sm:$0xff] }
  0xe1   :  { %v508_v23 = vmax.f32 %v500_v42, %v504_v31  ;;  %v509_v19 = vmax.f32 %v505_v52, %v506_v49 }
  0xe3   :  { %v510_v18 = vmax.f32 %v507_v29, %v508_v23 }
  0xe5   :  { %v511_v41 = vmax.f32 %v509_v19, %v510_v18 }
  0xe7   :  { %v512_v10 = vsub.f32 %v497_v14, %v511_v41  ;;  %v513_v27 = vsub.f32 %v498_v57, %v511_v41  ;;  %v514_v6 = vsub.f32 %v499_v47, %v511_v41  ;;  %v515_v40 = vsub.f32 %v500_v42, %v511_v41 }
  0xe8   :  { %v516_v44 = vsub.f32 %v501_v28, %v511_v41  ;;  %v517_v4 = vsub.f32 %v502_v7, %v511_v41  ;;  %v518_v56 = vsub.f32 %v503_v48, %v511_v41  ;;  %v519_v17 = vsub.f32 %v504_v31, %v511_v41  ;;  %v3662_v7 = vld [vmem:[#allocation10_spill] sm:$0xff] }
  0xe9   :  { %v520_v39 = vmul.f32 1.442695, %v512_v10  ;;  %v522_v30 = vmul.f32 1.442695, %v513_v27  ;;  %v524_v54 = vmul.f32 1.442695, %v514_v6  ;;  %v557_v48 = vmul.f32 %v3662_v7, %v3265_v20 }
  0xea   :  { %v526_v61 = vmul.f32 1.442695, %v515_v40  ;;  %v528_v53 = vmul.f32 1.442695, %v516_v44  ;;  %v530_v51 = vmul.f32 1.442695, %v517_v4 }
  0xeb   :  { %2223 = vpow2.f32 %v520_v39  ;;  %v532_v8 = vmul.f32 1.442695, %v518_v56  ;;  %v534_v35 = vmul.f32 1.442695, %v519_v17 }
  0xec   :  { %2225 = vpow2.f32 %v522_v30 }
  0xed   :  { %2227 = vpow2.f32 %v524_v54 }
  0xee   :  { %2229 = vpow2.f32 %v526_v61 }
  0xef   :  { %2231 = vpow2.f32 %v528_v53 }
  0xf0   :  { %2233 = vpow2.f32 %v530_v51 }
  0xf1   :  { %2235 = vpow2.f32 %v532_v8 }
  0xf2   :  { %2237 = vpow2.f32 %v534_v35 }
  0xf5   :  { %v2224_v15 = vpop.eup %2223 }
  0xf6   :  { %v2226_v43 = vpop.eup %2225 }
  0xf7   :  { %v536_v33 = vadd.f32 %v2226_v43, %v2224_v15  ;;  %v2228_v32 = vpop.eup %2227 }
  0xf8   :  { %v2230_v37 = vpop.eup %2229 }
  0xf9   :  { %v537_v45 = vadd.f32 %v2228_v32, %v536_v33  ;;  %v2232_v22 = vpop.eup %2231 }
  0xfa   :  { %v2234_v11 = vpop.eup %2233 }
  0xfb   :  { %v538_v3 = vadd.f32 %v2230_v37, %v537_v45  ;;  %v2236_v46 = vpop.eup %2235 }
  0xfc   :  { %v2238_v9 = vpop.eup %2237 }
  0xfd   :  { %v539_v25 = vadd.f32 %v2232_v22, %v538_v3 }
  0xff   :  { %v540_v63 = vadd.f32 %v2234_v11, %v539_v25 }
 0x101   :  { %v541_v58 = vadd.f32 %v2236_v46, %v540_v63 }
 0x103   :  { %v542_v60 = vadd.f32 %v2238_v9, %v541_v58 }
 0x105   :  { %2239 = vlog2.f32 %v542_v60 }
 0x10f   :  { %v2240_v0 = vpop.eup %2239 }
 0x110   :  { %v544_v21 = vmul.f32 0.6931472, %v2240_v0 }
 0x112   :  { %v545_v59 = vadd.f32 %v544_v21, %v511_v41 }
 0x114   :  { %v546_v57 = vadd.f32 %v2336_v38, %v545_v59 }
 0x116   :  { %v551_v28 = vmul.f32 %v3661_v50, %v546_v57 }
 0x118   :  { %v3301_v14 = vadd.f32 %v557_v48, %v551_v28 }
 0x11a   :  { %v697_v47 = vcombine.high %v3301_v14, %v3301_v14  ;;  %v704_v42 = vrot.slane %v3301_v14, %v2407_v26 }
 0x11c   :  { %v711_v31 = vrot.slane %v697_v47, %v2407_v26  ;;  %v712_v49 = vcombine.high %v704_v42, %v704_v42  ;;  %v720_v52 = vrot.slane %v704_v42, %v2407_v26 }
 0x11e   :  { %v713_v29 = vcombine.high %v711_v31, %v711_v31  ;;  %v727_v23 = vrot.slane %v711_v31, %v2407_v26  ;;  %v734_v19 = vrot.slane %v712_v49, %v2407_v26  ;;  %v742_v18 = vcombine.high %v720_v52, %v720_v52 }
 0x11f   :  { %v749_v6 = vrot.slane %v720_v52, %v2389_v5 }
 0x120   :  { %v741_v20 = vrot.slane %v713_v29, %v2407_v26  ;;  %v743_v41 = vcombine.high %v727_v23, %v727_v23  ;;  %v744_v10 = vcombine.high %v734_v19, %v734_v19  ;;  %v753_v27 = vrot.slane %v734_v19, %v2389_v5 }
 0x121   :  { %v757_v40 = vrot.slane %v742_v18, %v2389_v5  ;;  %v765_v39 = vrot.slane %v727_v23, %v2389_v5  ;;  %v786_v8 = vadd.f32 %v749_v6, %v3013_v24 }
 0x122   :  { %v745_v30 = vcombine.high %v741_v20, %v741_v20  ;;  %v761_v44 = vrot.slane %v744_v10, %v2389_v5  ;;  %v769_v54 = vrot.slane %v741_v20, %v2389_v5  ;;  %v773_v4 = vrot.slane %v743_v41, %v2389_v5 }
 0x123   :  { %v787_v61 = vadd.f32 %v753_v27, %v2893_v2  ;;  %v790_v53 = vadd.f32 %v765_v39, %v2985_v36  ;;  %v788_v35 = vadd.f32 %v757_v40, %v3660_v13 }
 0x124   :  { %v777_v56 = vrot.slane %v745_v30, %v2389_v5  ;;  %v791_v17 = vadd.f32 %v769_v54, %v3083_v1  ;;  %v792_v51 = vadd.f32 %v773_v4, %v3059_v55  ;;  %v789_v15 = vadd.f32 %v761_v44, %v3065_v62  ;;  %v2337_v4 = vld [vmem:[%s3475_s0 + $0x18] sm:$0xff] }
 0x125   :  { %v794_v32 = vmax.f32 %v786_v8, %v790_v53 }
 0x126   :  { %v793_v43 = vadd.f32 %v777_v56, %v3105_v12  ;;  %v795_v33 = vmax.f32 %v787_v61, %v791_v17  ;;  %v796_v45 = vmax.f32 %v788_v35, %v792_v51  ;;  %v3663_v56 = vld [vmem:[#allocation13_spill] sm:$0xff] }
 0x128   :  { %v797_v37 = vmax.f32 %v789_v15, %v793_v43  ;;  %v798_v3 = vmax.f32 %v794_v32, %v795_v33 }
 0x12a   :  { %v799_v22 = vmax.f32 %v796_v45, %v797_v37 }
 0x12c   :  { %v800_v25 = vmax.f32 %v798_v3, %v799_v22 }
 0x12e   :  { %v801_v11 = vsub.f32 %v786_v8, %v800_v25  ;;  %v802_v63 = vsub.f32 %v787_v61, %v800_v25  ;;  %v803_v46 = vsub.f32 %v788_v35, %v800_v25  ;;  %v804_v58 = vsub.f32 %v789_v15, %v800_v25 }
 0x12f   :  { %v805_v0 = vsub.f32 %v790_v53, %v800_v25  ;;  %v806_v59 = vsub.f32 %v791_v17, %v800_v25  ;;  %v807_v57 = vsub.f32 %v792_v51, %v800_v25  ;;  %v808_v28 = vsub.f32 %v793_v43, %v800_v25  ;;  %v3664_v17 = vld [vmem:[#allocation12_spill] sm:$0xff] }
 0x130   :  { %v809_v9 = vmul.f32 1.442695, %v801_v11  ;;  %v811_v60 = vmul.f32 1.442695, %v802_v63  ;;  %v813_v21 = vmul.f32 1.442695, %v803_v46  ;;  %v846_v51 = vmul.f32 %v3664_v17, %v3301_v14 }
 0x131   :  { %v815_v38 = vmul.f32 1.442695, %v804_v58  ;;  %v817_v50 = vmul.f32 1.442695, %v805_v0  ;;  %v819_v7 = vmul.f32 1.442695, %v806_v59 }
 0x132   :  { %2241 = vpow2.f32 %v809_v9  ;;  %v821_v48 = vmul.f32 1.442695, %v807_v57  ;;  %v823_v47 = vmul.f32 1.442695, %v808_v28 }
 0x133   :  { %2243 = vpow2.f32 %v811_v60 }
 0x134   :  { %2245 = vpow2.f32 %v813_v21 }
 0x135   :  { %2247 = vpow2.f32 %v815_v38 }
 0x136   :  { %2249 = vpow2.f32 %v817_v50 }
 0x137   :  { %2251 = vpow2.f32 %v819_v7 }
 0x138   :  { %2253 = vpow2.f32 %v821_v48 }
 0x139   :  { %2255 = vpow2.f32 %v823_v47 }
 0x13c   :  { %v2242_v42 = vpop.eup %2241 }
 0x13d   :  { %v2244_v31 = vpop.eup %2243 }
 0x13e   :  { %v825_v49 = vadd.f32 %v2244_v31, %v2242_v42  ;;  %v2246_v52 = vpop.eup %2245 }
 0x13f   :  { %v2248_v23 = vpop.eup %2247 }
 0x140   :  { %v826_v29 = vadd.f32 %v2246_v52, %v825_v49  ;;  %v2250_v18 = vpop.eup %2249 }
 0x141   :  { %v2252_v41 = vpop.eup %2251 }
 0x142   :  { %v827_v19 = vadd.f32 %v2248_v23, %v826_v29  ;;  %v2254_v27 = vpop.eup %2253 }
 0x143   :  { %v2256_v40 = vpop.eup %2255 }
 0x144   :  { %v828_v20 = vadd.f32 %v2250_v18, %v827_v19 }
 0x146   :  { %v829_v10 = vadd.f32 %v2252_v41, %v828_v20 }
 0x148   :  { %v830_v6 = vadd.f32 %v2254_v27, %v829_v10 }
 0x14a   :  { %v831_v39 = vadd.f32 %v2256_v40, %v830_v6 }
 0x14c   :  { %2257 = vlog2.f32 %v831_v39 }
 0x156   :  { %v2258_v30 = vpop.eup %2257 }
 0x157   :  { %v833_v44 = vmul.f32 0.6931472, %v2258_v30 }
 0x159   :  { %v834_v54 = vadd.f32 %v833_v44, %v800_v25 }
 0x15b   :  { %v835_v61 = vadd.f32 %v2337_v4, %v834_v54 }
 0x15d   :  { %v840_v53 = vmul.f32 %v3663_v56, %v835_v61 }
 0x15f   :  { %v3334_v8 = vadd.f32 %v846_v51, %v840_v53 }
 0x161   :  { %v986_v35 = vcombine.high %v3334_v8, %v3334_v8  ;;  %v993_v15 = vrot.slane %v3334_v8, %v2407_v26 }
 0x163   :  { %v1000_v43 = vrot.slane %v986_v35, %v2407_v26  ;;  %v1001_v33 = vcombine.high %v993_v15, %v993_v15  ;;  %v1009_v32 = vrot.slane %v993_v15, %v2407_v26 }
 0x165   :  { %v1002_v45 = vcombine.high %v1000_v43, %v1000_v43  ;;  %v1016_v37 = vrot.slane %v1000_v43, %v2407_v26  ;;  %v1023_v3 = vrot.slane %v1001_v33, %v2407_v26  ;;  %v1031_v22 = vcombine.high %v1009_v32, %v1009_v32 }
 0x166   :  { %v1038_v46 = vrot.slane %v1009_v32, %v2389_v5 }
 0x167   :  { %v1030_v14 = vrot.slane %v1002_v45, %v2407_v26  ;;  %v1032_v25 = vcombine.high %v1016_v37, %v1016_v37  ;;  %v1033_v11 = vcombine.high %v1023_v3, %v1023_v3  ;;  %v1042_v63 = vrot.slane %v1023_v3, %v2389_v5 }
 0x168   :  { %v1046_v58 = vrot.slane %v1031_v22, %v2389_v5  ;;  %v1054_v9 = vrot.slane %v1016_v37, %v2389_v5  ;;  %v1075_v48 = vadd.f32 %v1038_v46, %v3013_v24 }
 0x169   :  { %v1034_v60 = vcombine.high %v1030_v14, %v1030_v14  ;;  %v1050_v0 = vrot.slane %v1033_v11, %v2389_v5  ;;  %v1058_v21 = vrot.slane %v1030_v14, %v2389_v5  ;;  %v1062_v59 = vrot.slane %v1032_v25, %v2389_v5 }
 0x16a   :  { %v1076_v38 = vadd.f32 %v1042_v63, %v2893_v2  ;;  %v1079_v50 = vadd.f32 %v1054_v9, %v2985_v36  ;;  %v1077_v47 = vadd.f32 %v1046_v58, %v3660_v13 }
 0x16b   :  { %v1066_v57 = vrot.slane %v1034_v60, %v2389_v5  ;;  %v1080_v28 = vadd.f32 %v1058_v21, %v3083_v1  ;;  %v1081_v7 = vadd.f32 %v1062_v59, %v3059_v55  ;;  %v1078_v42 = vadd.f32 %v1050_v0, %v3065_v62  ;;  %v2338_v59 = vld [vmem:[%s3475_s0 + $0x20] sm:$0xff] }
 0x16c   :  { %v1083_v52 = vmax.f32 %v1075_v48, %v1079_v50 }
 0x16d   :  { %v1082_v31 = vadd.f32 %v1066_v57, %v3105_v12  ;;  %v1084_v49 = vmax.f32 %v1076_v38, %v1080_v28  ;;  %v1085_v29 = vmax.f32 %v1077_v47, %v1081_v7  ;;  %v3665_v57 = vld [vmem:[#allocation17_spill] sm:$0xff] }
 0x16f   :  { %v1086_v23 = vmax.f32 %v1078_v42, %v1082_v31  ;;  %v1087_v19 = vmax.f32 %v1083_v52, %v1084_v49 }
 0x171   :  { %v1088_v18 = vmax.f32 %v1085_v29, %v1086_v23 }
 0x173   :  { %v1089_v20 = vmax.f32 %v1087_v19, %v1088_v18 }
 0x175   :  { %v1090_v41 = vsub.f32 %v1075_v48, %v1089_v20  ;;  %v1091_v10 = vsub.f32 %v1076_v38, %v1089_v20  ;;  %v1092_v27 = vsub.f32 %v1077_v47, %v1089_v20  ;;  %v1093_v6 = vsub.f32 %v1078_v42, %v1089_v20 }
 0x176   :  { %v1094_v30 = vsub.f32 %v1079_v50, %v1089_v20  ;;  %v1095_v54 = vsub.f32 %v1080_v28, %v1089_v20  ;;  %v1096_v61 = vsub.f32 %v1081_v7, %v1089_v20  ;;  %v1097_v53 = vsub.f32 %v1082_v31, %v1089_v20  ;;  %v3666_v28 = vld [vmem:[#allocation18_spill] sm:$0xff] }
 0x177   :  { %v1098_v40 = vmul.f32 1.442695, %v1090_v41  ;;  %v1100_v39 = vmul.f32 1.442695, %v1091_v10  ;;  %v1102_v44 = vmul.f32 1.442695, %v1092_v27  ;;  %v1135_v7 = vmul.f32 %v3666_v28, %v3334_v8 }
 0x178   :  { %v1104_v4 = vmul.f32 1.442695, %v1093_v6  ;;  %v1106_v56 = vmul.f32 1.442695, %v1094_v30  ;;  %v1108_v17 = vmul.f32 1.442695, %v1095_v54 }
 0x179   :  { %2259 = vpow2.f32 %v1098_v40  ;;  %v1110_v51 = vmul.f32 1.442695, %v1096_v61  ;;  %v1112_v35 = vmul.f32 1.442695, %v1097_v53 }
 0x17a   :  { %2261 = vpow2.f32 %v1100_v39 }
 0x17b   :  { %2263 = vpow2.f32 %v1102_v44 }
 0x17c   :  { %2265 = vpow2.f32 %v1104_v4 }
 0x17d   :  { %2267 = vpow2.f32 %v1106_v56 }
 0x17e   :  { %2269 = vpow2.f32 %v1108_v17 }
 0x17f   :  { %2271 = vpow2.f32 %v1110_v51 }
 0x180   :  { %2273 = vpow2.f32 %v1112_v35 }
 0x183   :  { %v2260_v15 = vpop.eup %2259 }
 0x184   :  { %v2262_v43 = vpop.eup %2261 }
 0x185   :  { %v1114_v33 = vadd.f32 %v2262_v43, %v2260_v15  ;;  %v2264_v32 = vpop.eup %2263 }
 0x186   :  { %v2266_v37 = vpop.eup %2265 }
 0x187   :  { %v1115_v45 = vadd.f32 %v2264_v32, %v1114_v33  ;;  %v2268_v22 = vpop.eup %2267 }
 0x188   :  { %v2270_v25 = vpop.eup %2269 }
 0x189   :  { %v1116_v3 = vadd.f32 %v2266_v37, %v1115_v45  ;;  %v2272_v63 = vpop.eup %2271 }
 0x18a   :  { %v2274_v58 = vpop.eup %2273 }
 0x18b   :  { %v1117_v14 = vadd.f32 %v2268_v22, %v1116_v3 }
 0x18d   :  { %v1118_v11 = vadd.f32 %v2270_v25, %v1117_v14 }
 0x18f   :  { %v1119_v46 = vadd.f32 %v2272_v63, %v1118_v11 }
 0x191   :  { %v1120_v9 = vadd.f32 %v2274_v58, %v1119_v46 }
 0x193   :  { %2275 = vlog2.f32 %v1120_v9 }
 0x19d   :  { %v2276_v60 = vpop.eup %2275 }
 0x19e   :  { %v1122_v0 = vmul.f32 0.6931472, %v2276_v60 }
 0x1a0   :  { %v1123_v21 = vadd.f32 %v1122_v0, %v1089_v20 }
 0x1a2   :  { %v1124_v38 = vadd.f32 %v2338_v59, %v1123_v21 }
 0x1a4   :  { %v1129_v50 = vmul.f32 %v3665_v57, %v1124_v38 }
 0x1a6   :  { %v3367_v48 = vadd.f32 %v1135_v7, %v1129_v50 }
 0x1a8   :  { %v1275_v47 = vcombine.high %v3367_v48, %v3367_v48  ;;  %v1282_v42 = vrot.slane %v3367_v48, %v2407_v26 }
 0x1aa   :  { %v1289_v31 = vrot.slane %v1275_v47, %v2407_v26  ;;  %v1290_v49 = vcombine.high %v1282_v42, %v1282_v42  ;;  %v1298_v52 = vrot.slane %v1282_v42, %v2407_v26 }
 0x1ac   :  { %v1291_v29 = vcombine.high %v1289_v31, %v1289_v31  ;;  %v1305_v23 = vrot.slane %v1289_v31, %v2407_v26  ;;  %v1312_v19 = vrot.slane %v1290_v49, %v2407_v26  ;;  %v1320_v18 = vcombine.high %v1298_v52, %v1298_v52 }
 0x1ad   :  { %v1327_v27 = vrot.slane %v1298_v52, %v2389_v5 }
 0x1ae   :  { %v1319_v8 = vrot.slane %v1291_v29, %v2407_v26  ;;  %v1321_v20 = vcombine.high %v1305_v23, %v1305_v23  ;;  %v1322_v41 = vcombine.high %v1312_v19, %v1312_v19  ;;  %v1331_v10 = vrot.slane %v1312_v19, %v2389_v5 }
 0x1af   :  { %v1335_v6 = vrot.slane %v1320_v18, %v2389_v5  ;;  %v1343_v40 = vrot.slane %v1305_v23, %v2389_v5  ;;  %v1364_v51 = vadd.f32 %v1327_v27, %v3013_v24 }
 0x1b0   :  { %v1323_v39 = vcombine.high %v1319_v8, %v1319_v8  ;;  %v1339_v30 = vrot.slane %v1322_v41, %v2389_v5  ;;  %v1347_v44 = vrot.slane %v1319_v8, %v2389_v5  ;;  %v1351_v54 = vrot.slane %v1321_v20, %v2389_v5 }
 0x1b1   :  { %v1365_v4 = vadd.f32 %v1331_v10, %v2893_v2  ;;  %v1368_v56 = vadd.f32 %v1343_v40, %v2985_v36  ;;  %v1366_v35 = vadd.f32 %v1335_v6, %v3660_v13 }
 0x1b2   :  { %v1355_v61 = vrot.slane %v1323_v39, %v2389_v5  ;;  %v1369_v53 = vadd.f32 %v1347_v44, %v3083_v1  ;;  %v1370_v17 = vadd.f32 %v1351_v54, %v3059_v55  ;;  %v1367_v15 = vadd.f32 %v1339_v30, %v3065_v62  ;;  %v2339_v54 = vld [vmem:[%s3475_s0 + $0x28] sm:$0xff] }
 0x1b3   :  { %v1372_v32 = vmax.f32 %v1364_v51, %v1368_v56 }
 0x1b4   :  { %v1371_v43 = vadd.f32 %v1355_v61, %v3105_v12  ;;  %v1373_v33 = vmax.f32 %v1365_v4, %v1369_v53  ;;  %v1374_v45 = vmax.f32 %v1366_v35, %v1370_v17  ;;  %v3667_v61 = vld [vmem:[#allocation27_spill] sm:$0xff] }
 0x1b6   :  { %v1375_v37 = vmax.f32 %v1367_v15, %v1371_v43  ;;  %v1376_v3 = vmax.f32 %v1372_v32, %v1373_v33 }
 0x1b8   :  { %v1377_v22 = vmax.f32 %v1374_v45, %v1375_v37 }
 0x1ba   :  { %v1378_v14 = vmax.f32 %v1376_v3, %v1377_v22 }
 0x1bc   :  { %v1379_v25 = vsub.f32 %v1364_v51, %v1378_v14  ;;  %v1380_v11 = vsub.f32 %v1365_v4, %v1378_v14  ;;  %v1381_v63 = vsub.f32 %v1366_v35, %v1378_v14  ;;  %v1382_v46 = vsub.f32 %v1367_v15, %v1378_v14 }
 0x1bd   :  { %v1383_v60 = vsub.f32 %v1368_v56, %v1378_v14  ;;  %v1384_v21 = vsub.f32 %v1369_v53, %v1378_v14  ;;  %v1385_v38 = vsub.f32 %v1370_v17, %v1378_v14  ;;  %v1386_v50 = vsub.f32 %v1371_v43, %v1378_v14  ;;  %v3668_v53 = vld [vmem:[#allocation28_spill] sm:$0xff] }
 0x1be   :  { %v1387_v58 = vmul.f32 1.442695, %v1379_v25  ;;  %v1389_v9 = vmul.f32 1.442695, %v1380_v11  ;;  %v1391_v0 = vmul.f32 1.442695, %v1381_v63  ;;  %v1424_v17 = vmul.f32 %v3668_v53, %v3367_v48 }
 0x1bf   :  { %v1393_v59 = vmul.f32 1.442695, %v1382_v46  ;;  %v1395_v57 = vmul.f32 1.442695, %v1383_v60  ;;  %v1397_v28 = vmul.f32 1.442695, %v1384_v21 }
 0x1c0   :  { %2277 = vpow2.f32 %v1387_v58  ;;  %v1399_v7 = vmul.f32 1.442695, %v1385_v38  ;;  %v1401_v47 = vmul.f32 1.442695, %v1386_v50 }
 0x1c1   :  { %2279 = vpow2.f32 %v1389_v9 }
 0x1c2   :  { %2281 = vpow2.f32 %v1391_v0 }
 0x1c3   :  { %2283 = vpow2.f32 %v1393_v59 }
 0x1c4   :  { %2285 = vpow2.f32 %v1395_v57 }
 0x1c5   :  { %2287 = vpow2.f32 %v1397_v28 }
 0x1c6   :  { %2289 = vpow2.f32 %v1399_v7 }
 0x1c7   :  { %2291 = vpow2.f32 %v1401_v47 }
 0x1ca   :  { %v2278_v42 = vpop.eup %2277 }
 0x1cb   :  { %v2280_v31 = vpop.eup %2279 }
 0x1cc   :  { %v1403_v49 = vadd.f32 %v2280_v31, %v2278_v42  ;;  %v2282_v52 = vpop.eup %2281 }
 0x1cd   :  { %v2284_v23 = vpop.eup %2283 }
 0x1ce   :  { %v1404_v29 = vadd.f32 %v2282_v52, %v1403_v49  ;;  %v2286_v18 = vpop.eup %2285 }
 0x1cf   :  { %v2288_v20 = vpop.eup %2287 }
 0x1d0   :  { %v1405_v19 = vadd.f32 %v2284_v23, %v1404_v29  ;;  %v2290_v10 = vpop.eup %2289 }
 0x1d1   :  { %v2292_v6 = vpop.eup %2291 }
 0x1d2   :  { %v1406_v8 = vadd.f32 %v2286_v18, %v1405_v19 }
 0x1d4   :  { %v1407_v41 = vadd.f32 %v2288_v20, %v1406_v8 }
 0x1d6   :  { %v1408_v27 = vadd.f32 %v2290_v10, %v1407_v41 }
 0x1d8   :  { %v1409_v40 = vadd.f32 %v2292_v6, %v1408_v27 }
 0x1da   :  { %2293 = vlog2.f32 %v1409_v40 }
 0x1e4   :  { %v2294_v39 = vpop.eup %2293 }
 0x1e5   :  { %v1411_v30 = vmul.f32 0.6931472, %v2294_v39 }
 0x1e7   :  { %v1412_v44 = vadd.f32 %v1411_v30, %v1378_v14 }
 0x1e9   :  { %v1413_v4 = vadd.f32 %v2339_v54, %v1412_v44 }
 0x1eb   :  { %v1418_v56 = vmul.f32 %v3667_v61, %v1413_v4 }
 0x1ed   :  { %v3400_v51 = vadd.f32 %v1424_v17, %v1418_v56 }
 0x1ef   :  { %v1564_v35 = vcombine.high %v3400_v51, %v3400_v51  ;;  %v1571_v15 = vrot.slane %v3400_v51, %v2407_v26 }
 0x1f1   :  { %v1578_v43 = vrot.slane %v1564_v35, %v2407_v26  ;;  %v1579_v33 = vcombine.high %v1571_v15, %v1571_v15  ;;  %v1587_v32 = vrot.slane %v1571_v15, %v2407_v26 }
 0x1f3   :  { %v1580_v45 = vcombine.high %v1578_v43, %v1578_v43  ;;  %v1594_v37 = vrot.slane %v1578_v43, %v2407_v26  ;;  %v1601_v3 = vrot.slane %v1579_v33, %v2407_v26  ;;  %v1609_v22 = vcombine.high %v1587_v32, %v1587_v32 }
 0x1f4   :  { %v1616_v63 = vrot.slane %v1587_v32, %v2389_v5 }
 0x1f5   :  { %v1608_v48 = vrot.slane %v1580_v45, %v2407_v26  ;;  %v1610_v14 = vcombine.high %v1594_v37, %v1594_v37  ;;  %v1611_v25 = vcombine.high %v1601_v3, %v1601_v3  ;;  %v1620_v11 = vrot.slane %v1601_v3, %v2389_v5 }
 0x1f6   :  { %v1624_v46 = vrot.slane %v1609_v22, %v2389_v5  ;;  %v1632_v58 = vrot.slane %v1594_v37, %v2389_v5  ;;  %v1653_v7 = vadd.f32 %v1616_v63, %v3013_v24 }
 0x1f7   :  { %v1612_v9 = vcombine.high %v1608_v48, %v1608_v48  ;;  %v1628_v60 = vrot.slane %v1611_v25, %v2389_v5  ;;  %v1636_v0 = vrot.slane %v1608_v48, %v2389_v5  ;;  %v1640_v21 = vrot.slane %v1610_v14, %v2389_v5 }
 0x1f8   :  { %v1654_v59 = vadd.f32 %v1620_v11, %v2893_v2  ;;  %v1657_v57 = vadd.f32 %v1632_v58, %v2985_v36  ;;  %v1655_v47 = vadd.f32 %v1624_v46, %v3660_v13 }
 0x1f9   :  { %v1644_v38 = vrot.slane %v1612_v9, %v2389_v5  ;;  %v1658_v50 = vadd.f32 %v1636_v0, %v3083_v1  ;;  %v1659_v28 = vadd.f32 %v1640_v21, %v3059_v55  ;;  %v1656_v42 = vadd.f32 %v1628_v60, %v3065_v62  ;;  %v2340_v21 = vld [vmem:[%s3475_s0 + $0x30] sm:$0xff] }
 0x1fa   :  { %v1661_v52 = vmax.f32 %v1653_v7, %v1657_v57 }
 0x1fb   :  { %v1660_v31 = vadd.f32 %v1644_v38, %v3105_v12  ;;  %v1662_v49 = vmax.f32 %v1654_v59, %v1658_v50  ;;  %v1663_v29 = vmax.f32 %v1655_v47, %v1659_v28  ;;  %v3669_v38 = vld [vmem:[#allocation37_spill] sm:$0xff] }
 0x1fd   :  { %v1664_v23 = vmax.f32 %v1656_v42, %v1660_v31  ;;  %v1665_v19 = vmax.f32 %v1661_v52, %v1662_v49 }
 0x1ff   :  { %v1666_v18 = vmax.f32 %v1663_v29, %v1664_v23 }
 0x201   :  { %v1667_v8 = vmax.f32 %v1665_v19, %v1666_v18 }
 0x203   :  { %v1668_v20 = vsub.f32 %v1653_v7, %v1667_v8  ;;  %v1669_v41 = vsub.f32 %v1654_v59, %v1667_v8  ;;  %v1670_v10 = vsub.f32 %v1655_v47, %v1667_v8  ;;  %v1671_v27 = vsub.f32 %v1656_v42, %v1667_v8 }
 0x204   :  { %v1672_v39 = vsub.f32 %v1657_v57, %v1667_v8  ;;  %v1673_v44 = vsub.f32 %v1658_v50, %v1667_v8  ;;  %v1674_v4 = vsub.f32 %v1659_v28, %v1667_v8  ;;  %v1675_v56 = vsub.f32 %v1660_v31, %v1667_v8  ;;  %v3670_v50 = vld [vmem:[#allocation38_spill] sm:$0xff] }
 0x205   :  { %v1676_v6 = vmul.f32 1.442695, %v1668_v20  ;;  %v1678_v40 = vmul.f32 1.442695, %v1669_v41  ;;  %v1680_v30 = vmul.f32 1.442695, %v1670_v10  ;;  %v1713_v28 = vmul.f32 %v3670_v50, %v3400_v51 }
 0x206   :  { %v1682_v54 = vmul.f32 1.442695, %v1671_v27  ;;  %v1684_v61 = vmul.f32 1.442695, %v1672_v39  ;;  %v1686_v53 = vmul.f32 1.442695, %v1673_v44 }
 0x207   :  { %2295 = vpow2.f32 %v1676_v6  ;;  %v1688_v17 = vmul.f32 1.442695, %v1674_v4  ;;  %v1690_v35 = vmul.f32 1.442695, %v1675_v56 }
 0x208   :  { %2297 = vpow2.f32 %v1678_v40 }
 0x209   :  { %2299 = vpow2.f32 %v1680_v30 }
 0x20a   :  { %2301 = vpow2.f32 %v1682_v54 }
 0x20b   :  { %2303 = vpow2.f32 %v1684_v61 }
 0x20c   :  { %2305 = vpow2.f32 %v1686_v53 }
 0x20d   :  { %2307 = vpow2.f32 %v1688_v17 }
 0x20e   :  { %2309 = vpow2.f32 %v1690_v35 }
 0x211   :  { %v2296_v15 = vpop.eup %2295 }
 0x212   :  { %v2298_v43 = vpop.eup %2297 }
 0x213   :  { %v1692_v33 = vadd.f32 %v2298_v43, %v2296_v15  ;;  %v2300_v32 = vpop.eup %2299 }
 0x214   :  { %v2302_v37 = vpop.eup %2301 }
 0x215   :  { %v1693_v45 = vadd.f32 %v2300_v32, %v1692_v33  ;;  %v2304_v22 = vpop.eup %2303 }
 0x216   :  { %v2306_v14 = vpop.eup %2305 }
 0x217   :  { %v1694_v3 = vadd.f32 %v2302_v37, %v1693_v45  ;;  %v2308_v11 = vpop.eup %2307 }
 0x218   :  { %v2310_v46 = vpop.eup %2309 }
 0x219   :  { %v1695_v48 = vadd.f32 %v2304_v22, %v1694_v3 }
 0x21b   :  { %v1696_v25 = vadd.f32 %v2306_v14, %v1695_v48 }
 0x21d   :  { %v1697_v63 = vadd.f32 %v2308_v11, %v1696_v25 }
 0x21f   :  { %v1698_v58 = vadd.f32 %v2310_v46, %v1697_v63 }
 0x221   :  { %2311 = vlog2.f32 %v1698_v58 }
 0x22b   :  { %v2312_v9 = vpop.eup %2311 }
 0x22c   :  { %v1700_v60 = vmul.f32 0.6931472, %v2312_v9 }
 0x22e   :  { %v1701_v0 = vadd.f32 %v1700_v60, %v1667_v8 }
 0x230   :  { %v1702_v59 = vadd.f32 %v2340_v21, %v1701_v0 }
 0x232   :  { %v1707_v57 = vmul.f32 %v3669_v38, %v1702_v59 }
 0x234   :  { %v3433_v7 = vadd.f32 %v1713_v28, %v1707_v57 }
 0x236   :  { %v1853_v47 = vcombine.high %v3433_v7, %v3433_v7  ;;  %v1860_v42 = vrot.slane %v3433_v7, %v2407_v26 }
 0x238   :  { %v1867_v31 = vrot.slane %v1853_v47, %v2407_v26  ;;  %v1868_v49 = vcombine.high %v1860_v42, %v1860_v42  ;;  %v1876_v52 = vrot.slane %v1860_v42, %v2407_v26 }
 0x23a   :  { %v1869_v29 = vcombine.high %v1867_v31, %v1867_v31  ;;  %v1883_v23 = vrot.slane %v1867_v31, %v2407_v26  ;;  %v1890_v19 = vrot.slane %v1868_v49, %v2407_v26  ;;  %v1898_v18 = vcombine.high %v1876_v52, %v1876_v52 }
 0x23b   :  { %v1905_v10 = vrot.slane %v1876_v52, %v2389_v5 }
 0x23c   :  { %v1897_v51 = vrot.slane %v1869_v29, %v2407_v26  ;;  %v1899_v8 = vcombine.high %v1883_v23, %v1883_v23  ;;  %v1900_v20 = vcombine.high %v1890_v19, %v1890_v19  ;;  %v1909_v41 = vrot.slane %v1890_v19, %v2389_v5 }
 0x23d   :  { %v1913_v27 = vrot.slane %v1898_v18, %v2389_v5  ;;  %v1921_v6 = vrot.slane %v1883_v23, %v2389_v5  ;;  %v1942_v53 = vadd.f32 %v1905_v10, %v3013_v24  ;;  %v3672_v10 = vld [vmem:[#allocation45_spill] sm:$0xff] }
 0x23e   :  { %v1901_v40 = vcombine.high %v1897_v51, %v1897_v51  ;;  %v1917_v39 = vrot.slane %v1900_v20, %v2389_v5  ;;  %v1925_v30 = vrot.slane %v1897_v51, %v2389_v5  ;;  %v1929_v44 = vrot.slane %v1899_v8, %v2389_v5  ;;  %v2341_v51 = vld [vmem:[%s3475_s0 + $0x38] sm:$0xff]  ;;  %v3671_v20 = vld [vmem:[#allocation44_spill] sm:$0xff] }
 0x23f   :  { %v1943_v54 = vadd.f32 %v1909_v41, %v2893_v2  ;;  %v1946_v4 = vadd.f32 %v1921_v6, %v2985_v36  ;;  %v1944_v17 = vadd.f32 %v1913_v27, %v3660_v13  ;;  %v2002_v27 = vmul.f32 %v3672_v10, %v3433_v7 }
 0x240   :  { %v1933_v26 = vrot.slane %v1901_v40, %v2389_v5  ;;  %v1947_v61 = vadd.f32 %v1925_v30, %v3083_v1  ;;  %v1948_v56 = vadd.f32 %v1929_v44, %v3059_v55  ;;  %v1945_v35 = vadd.f32 %v1917_v39, %v3065_v62 }
 0x241   :  { %v1950_v33 = vmax.f32 %v1942_v53, %v1946_v4 }
 0x242   :  { %v1949_v15 = vadd.f32 %v1933_v26, %v3105_v12  ;;  %v1951_v43 = vmax.f32 %v1943_v54, %v1947_v61  ;;  %v1952_v32 = vmax.f32 %v1944_v17, %v1948_v56 }
 0x244   :  { %v1953_v2 = vmax.f32 %v1945_v35, %v1949_v15  ;;  %v1954_v45 = vmax.f32 %v1950_v33, %v1951_v43 }
 0x246   :  { %v1955_v5 = vmax.f32 %v1952_v32, %v1953_v2 }
 0x248   :  { %v1956_v37 = vmax.f32 %v1954_v45, %v1955_v5 }
 0x24a   :  { %v1957_v36 = vsub.f32 %v1942_v53, %v1956_v37  ;;  %v1958_v3 = vsub.f32 %v1943_v54, %v1956_v37  ;;  %v1959_v1 = vsub.f32 %v1944_v17, %v1956_v37  ;;  %v1960_v22 = vsub.f32 %v1945_v35, %v1956_v37 }
 0x24b   :  { %v1961_v24 = vsub.f32 %v1946_v4, %v1956_v37  ;;  %v1962_v13 = vsub.f32 %v1947_v61, %v1956_v37  ;;  %v1963_v12 = vsub.f32 %v1948_v56, %v1956_v37  ;;  %v1964_v11 = vsub.f32 %v1949_v15, %v1956_v37 }
 0x24c   :  { %v1965_v55 = vmul.f32 1.442695, %v1957_v36  ;;  %v1967_v48 = vmul.f32 1.442695, %v1958_v3  ;;  %v1969_v14 = vmul.f32 1.442695, %v1959_v1 }
 0x24d   :  { %v1971_v62 = vmul.f32 1.442695, %v1960_v22  ;;  %v1973_v25 = vmul.f32 1.442695, %v1961_v24  ;;  %v1975_v63 = vmul.f32 1.442695, %v1962_v13 }
 0x24e   :  { %2313 = vpow2.f32 %v1965_v55  ;;  %v1977_v46 = vmul.f32 1.442695, %v1963_v12  ;;  %v1979_v58 = vmul.f32 1.442695, %v1964_v11 }
 0x24f   :  { %2315 = vpow2.f32 %v1967_v48 }
 0x250   :  { %2317 = vpow2.f32 %v1969_v14 }
 0x251   :  { %2319 = vpow2.f32 %v1971_v62 }
 0x252   :  { %2321 = vpow2.f32 %v1973_v25 }
 0x253   :  { %2323 = vpow2.f32 %v1975_v63 }
 0x254   :  { %2325 = vpow2.f32 %v1977_v46 }
 0x255   :  { %2327 = vpow2.f32 %v1979_v58 }
 0x258   :  { %v2314_v9 = vpop.eup %2313 }
 0x259   :  { %v2316_v60 = vpop.eup %2315 }
 0x25a   :  { %v1981_v0 = vadd.f32 %v2316_v60, %v2314_v9  ;;  %v2318_v21 = vpop.eup %2317 }
 0x25b   :  { %v2320_v38 = vpop.eup %2319 }
 0x25c   :  { %v1982_v59 = vadd.f32 %v2318_v21, %v1981_v0  ;;  %v2322_v50 = vpop.eup %2321 }
 0x25d   :  { %v2324_v47 = vpop.eup %2323 }
 0x25e   :  { %v1983_v57 = vadd.f32 %v2320_v38, %v1982_v59  ;;  %v2326_v31 = vpop.eup %2325 }
 0x25f   :  { %v2328_v52 = vpop.eup %2327 }
 0x260   :  { %v1984_v28 = vadd.f32 %v2322_v50, %v1983_v57 }
 0x262   :  { %v1985_v42 = vadd.f32 %v2324_v47, %v1984_v28 }
 0x264   :  { %v1986_v49 = vadd.f32 %v2326_v31, %v1985_v42 }
 0x266   :  { %v1987_v29 = vadd.f32 %v2328_v52, %v1986_v49 }
 0x268   :  { %2329 = vlog2.f32 %v1987_v29 }
 0x272   :  { %v2330_v23 = vpop.eup %2329 }
 0x273   :  { %v1989_v19 = vmul.f32 0.6931472, %v2330_v23 }
 0x275   :  { %v1990_v18 = vadd.f32 %v1989_v19, %v1956_v37 }
 0x277   :  { %v1991_v8 = vadd.f32 %v2341_v51, %v1990_v18 }
 0x279   :  { %v1996_v41 = vmul.f32 %v3671_v20, %v1991_v8 }
 0x27b   :  { %v2003_v6 = vadd.f32 %v2002_v27, %v1996_v41 }
 0x27d   :  { %v2135_v40 = vadd.f32 %v3227_v16, %v2003_v6 }
 0x27f   :  { %v2136_v39 = vrot.slane %v2135_v40, 4 }
 0x281   :  { %v2137_v30 = vmax.f32 %v2135_v40, %v2136_v39 }
 0x283   :  { %v2138_v44 = vrot.slane %v2137_v30, 2 }
 0x285   :  { %v2139_v54 = vmax.f32 %v2137_v30, %v2138_v44 }
 0x287   :  { %v2140_v26 = vrot.slane %v2139_v54, 1 }
 0x289   :  { %v2141_v4 = vmax.f32 %v2139_v54, %v2140_v26 }
 0x28b   :  { %v2142_v61 = vsub.f32 %v2135_v40, %v2141_v4 }
 0x28d   :  { %v2143_v56 = vmul.f32 1.442695, %v2142_v61 }
 0x28f   :  { %2331 = vpow2.f32 %v2143_v56 }
 0x299   :  { %v2332_v53 = vpop.eup %2331 }
 0x29a   :  { %v2145_v17 = vrot.slane %v2332_v53, 4 }
 0x29c   :  { %v2146_v35 = vadd.f32 %v2332_v53, %v2145_v17 }
 0x29e   :  { %v2147_v15 = vrot.slane %v2146_v35, 2 }
 0x2a0   :  { %v2148_v43 = vadd.f32 %v2147_v15, %v2146_v35 }
 0x2a2   :  { %v2149_v33 = vrot.slane %v2148_v43, 1 }
 0x2a4   :  { %v2150_v32 = vadd.f32 %v2149_v33, %v2148_v43 }
 0x2a6   :  { %2333 = vlog2.f32 %v2150_v32 }
 0x2b0   :  { %v2334_v7 = vpop.eup %2333 }
 0x2b1   :  { %v2152_v2 = vmul.f32 0.6931472, %v2334_v7 }
 0x2b3   :  { %v2153_v16 = vadd.f32 %v2152_v2, %v2141_v4 }
 0x2b5   :  { %v2171_v45 = vsub.f32 %v2153_v16, %v3276_v34 }
 0x2b7   :  { %2172 = vst [vmem:[%s3477_s6] sm:$0x1] %v2171_v45 }

</bundles_post_ra>
